<compile_context>
chip_gen: v7x
topology: tpu7x:2x2x1
jax: 0.10.0
libtpu: 0.0.40
codegen_flags: <defaults>
</compile_context>

<pallas_src>
import functools

import numpy as np
import jax
import jax.numpy as jnp
from jax.experimental import pallas as pl
from jax.experimental.pallas import tpu as pltpu


# ----------------------------------------------------------------------------
# Pallas kernel: one 3x3 conv layer for one image, taps built in-kernel
# ----------------------------------------------------------------------------
def _conv_taps_kernel(x_ref, w_ref, o_ref, *, taps, m_out, apply_lrelu, negval):
    # x_ref: (1, P, M_in, Cf)   padded activation, flattened over (rows, cols);
    #                           P = 1 (stride 1) or 2 (H-parity planes, stride 2);
    #                           Cf = Cin (stride 1) or 2*Cin (W-parity folded).
    # w_ref: (9*Cin, Cout)      packed 3x3 weights, (kh, kw, ci) row-major.
    # o_ref: (1, M_out, Cout)   "extended" output rows (garbage columns are
    #                           sliced off in the wrapper).
    # taps:  static tuple of (plane, shift, c0, csz, w_off) — each tap is one
    #        contiguous (M_out, csz) slice of x times a (csz, Cout) weight slab.
    cout = o_ref.shape[-1]
    acc = jnp.zeros((m_out, cout), jnp.float32)
    for plane, shift, c0, csz, w_off in taps:
        xs = x_ref[0, plane, pl.ds(shift, m_out), pl.ds(c0, csz)]
        ws = w_ref[pl.ds(w_off, csz), :]
        acc = acc + jnp.dot(
            xs.astype(jnp.float32),
            ws.astype(jnp.float32),
            preferred_element_type=jnp.float32,
        )
    if apply_lrelu:
        acc = jnp.where(acc >= 0.0, acc, negval * acc)
    o_ref[0] = acc.astype(o_ref.dtype)


# ----------------------------------------------------------------------------
# Wrapper: layout folding (free reshapes + one 1x transpose) + pallas_call
# ----------------------------------------------------------------------------
def conv3x3_pallas(x_nhwc, w_hwio, *, stride, apply_lrelu, negval=0.2):
    n, h, w, cin = x_nhwc.shape
    assert w_hwio.shape[:3] == (3, 3, cin)
    cout = w_hwio.shape[-1]

    if stride == 2:
        assert h % 2 == 0 and w % 2 == 0, "stride-2 path assumes even H/W"
        ho, wo = h // 2, w // 2
        # Pad H by (1,3) (extra zero rows keep the garbage-column taps in
        # bounds after flattening); W by (1,1) as usual.  hp, wp are even.
        xp = jnp.pad(x_nhwc, ((0, 0), (1, 3), (1, 1), (0, 0)))
        hp, wp = h + 4, w + 2
        hh, wh = hp // 2, wp // 2              # hh = ho + 2, wh = wo + 1
        # Free reshape: fold W-parity into channels -> (n, hh, 2, wh, 2*cin);
        # then pull the H-parity out as a leading plane dim (1x-byte shuffle).
        x6 = xp.reshape(n, hh, 2, wh, 2 * cin)
        x_pl = jnp.transpose(x6, (0, 2, 1, 3, 4)).reshape(n, 2, hh * wh, 2 * cin)
        planes, cf, w_row = 2, 2 * cin, wh
        taps = []
        for kh in range(3):
            pr, dh = kh % 2, kh // 2
            # kw = 0,1 read the same column pair -> one GEMM with K = 2*Cin.
            taps.append((pr, dh * wh, 0, 2 * cin, kh * 3 * cin))
            # kw = 2 reads the next pair's even half -> K = Cin.
            taps.append((pr, dh * wh + 1, 0, cin, kh * 3 * cin + 2 * cin))
    elif stride == 1:
        ho, wo = h, w
        xp = jnp.pad(x_nhwc, ((0, 0), (1, 3), (1, 1), (0, 0)))
        hp, wp = h + 4, w + 2
        x_pl = xp.reshape(n, 1, hp * wp, cin)
        planes, cf, w_row = 1, cin, wp
        taps = [(0, kh * wp + kw, 0, cin, (3 * kh + kw) * cin)
                for kh in range(3) for kw in range(3)]
    else:
        raise ValueError("only stride 1 or 2 supported")

    taps = tuple(taps)
    m_in = x_pl.shape[2]
    m_out = ho * w_row                       # extended rows (Wo real + pad cols)
    w_pack = w_hwio.reshape(9 * cin, cout)   # (kh, kw, ci) row-major packing

    kernel = functools.partial(
        _conv_taps_kernel, taps=taps, m_out=m_out,
        apply_lrelu=apply_lrelu, negval=negval,
    )
    out_ext = pl.pallas_call(
        kernel,
        grid=(n,),
        out_shape=jax.ShapeDtypeStruct((n, m_out, cout), x_nhwc.dtype),
        in_specs=[
            pl.BlockSpec((1, planes, m_in, cf), lambda i: (i, 0, 0, 0)),
            pl.BlockSpec((9 * cin, cout), lambda i: (0, 0)),   # resident weight
        ],
        out_specs=pl.BlockSpec((1, m_out, cout), lambda i: (i, 0, 0)),
        compiler_params=pltpu.CompilerParams(
            dimension_semantics=("parallel",),          # batch -> megacore
            vmem_limit_bytes=32 * 1024 * 1024,
        ),
    )(x_pl, w_pack)

    # Drop the per-row over-computed columns; back to NHWC.
    out = out_ext.reshape(n, ho, w_row, cout)[:, :, :wo, :]
    return out


# ----------------------------------------------------------------------------
# DownBlock_drn forward (NCHW in / NCHW out, like the PyTorch module)
# ----------------------------------------------------------------------------
def make_down_block_params(scale, nFeat, in_channels, out_channels, key):
    """Deterministic weight init; weights stored HWIO (3, 3, Cin, Cout)."""
    n_down = int(np.log2(scale))
    chans_in = [in_channels] + [nFeat] * (n_down - 1) + [nFeat]
    chans_out = [nFeat] * n_down + [out_channels]
    weights = []
    for ci, co in zip(chans_in, chans_out):
        key, sub = jax.random.split(key)
        bound = 1.0 / np.sqrt(ci * 9)
        weights.append(
            jax.random.uniform(sub, (3, 3, ci, co), jnp.float32,
                               minval=-bound, maxval=bound)
        )
    strides = [2] * n_down + [1]
    lrelu = [True] * n_down + [False]
    return weights, strides, lrelu


def down_block_drn_forward(x_nchw, weights, strides, lrelu_flags, negval=0.2):
    x = jnp.transpose(x_nchw, (0, 2, 3, 1))  # NCHW -> NHWC
    for w, s, lr in zip(weights, strides, lrelu_flags):
        x = conv3x3_pallas(x, w, stride=s, apply_lrelu=lr, negval=negval)
    return jnp.transpose(x, (0, 3, 1, 2))    # NHWC -> NCHW


# ----------------------------------------------------------------------------
# Pure-JAX reference (lax conv) for correctness check
# ----------------------------------------------------------------------------
def down_block_drn_reference(x_nchw, weights, strides, lrelu_flags, negval=0.2):
    x = x_nchw
    for w, s, lr in zip(weights, strides, lrelu_flags):
        x = jax.lax.conv_general_dilated(
            x, w, window_strides=(s, s), padding=((1, 1), (1, 1)),
            dimension_numbers=("NCHW", "HWIO", "NCHW"),
        )
        if lr:
            x = jnp.where(x >= 0.0, x, negval * x)
    return x


if __name__ == "__main__":
    # DownBlock_drn(scale=4, nFeat=8, in_channels=4, out_channels=4)
    scale, nFeat, in_ch, out_ch = 4, 8, 4, 4

    key = jax.random.PRNGKey(0)
    key, xk = jax.random.split(key)
    x = jax.random.normal(xk, (2, in_ch, 16, 16), jnp.float32)  # NCHW

    weights, strides, lrelu_flags = make_down_block_params(
        scale, nFeat, in_ch, out_ch, key
    )

    fwd = jax.jit(functools.partial(
        down_block_drn_forward, strides=strides, lrelu_flags=lrelu_flags))
    out = jax.block_until_ready(fwd(x, weights))

    ref = jax.block_until_ready(
        down_block_drn_reference(x, weights, strides, lrelu_flags))

    assert out.shape == (2, out_ch, 4, 4), out.shape
    np.testing.assert_allclose(np.asarray(out), np.asarray(ref),
                               rtol=1e-3, atol=1e-3)

    print("KERNEL_OK")
</pallas_src>

<mosaic_0001>
module attributes {stable_mosaic.version = 11 : i64} {
  func.func @_conv_taps_kernel(%arg0: i32, %arg1: memref<1x2x90x8xf32, #tpu.memory_space<vmem>>, %arg2: memref<36x8xf32, #tpu.memory_space<vmem>>, %arg3: memref<1x72x8xf32, #tpu.memory_space<vmem>>) attributes {dimension_semantics = [#tpu.dimension_semantics<parallel>], iteration_bounds = array<i64: 2>, scalar_prefetch = 0 : i64, scratch_operands = 0 : i64, tpu.core_type = #tpu.core_type<tc>, window_params = [{transform_indices = @transform_0, window_bounds = array<i64: 1, 2, 90, 8>}, {pipeline_mode = #tpu.pipeline_mode<synchronous>, transform_indices = @transform_1, window_bounds = array<i64: 36, 8>}, {transform_indices = @transform_2, window_bounds = array<i64: 1, 72, 8>}]} {
    %cst = arith.constant 0.000000e+00 : f32
    %0 = vector.broadcast %cst : f32 to vector<72x8xf32>
    %c0 = arith.constant 0 : index
    %c0_0 = arith.constant 0 : index
    %c0_1 = arith.constant 0 : index
    %c0_2 = arith.constant 0 : index
    %1 = vector.load %arg1[%c0, %c0_0, %c0_1, %c0_2] : memref<1x2x90x8xf32, #tpu.memory_space<vmem>>, vector<1x1x72x8xf32>
    %2 = vector.shape_cast %1 : vector<1x1x72x8xf32> to vector<72x8xf32>
    %c0_3 = arith.constant 0 : index
    %c0_4 = arith.constant 0 : index
    %3 = vector.load %arg2[%c0_3, %c0_4] : memref<36x8xf32, #tpu.memory_space<vmem>>, vector<8x8xf32>
    %cst_5 = arith.constant dense<0.000000e+00> : vector<72x8xf32>
    %4 = tpu.matmul %2, %3, %cst_5 {dimension_numbers = #tpu.dot_dimension_numbers<[1], [0], [0], [1], [0, 0, 1, 1], [], []>} : vector<72x8xf32>, vector<8x8xf32>, vector<72x8xf32> -> vector<72x8xf32>
    %5 = arith.addf %0, %4 : vector<72x8xf32>
    %c0_6 = arith.constant 0 : index
    %c0_7 = arith.constant 0 : index
    %c1 = arith.constant 1 : index
    %c0_8 = arith.constant 0 : index
    %6 = vector.load %arg1[%c0_6, %c0_7, %c1, %c0_8] : memref<1x2x90x8xf32, #tpu.memory_space<vmem>>, vector<1x1x72x4xf32>
    %7 = vector.shape_cast %6 : vector<1x1x72x4xf32> to vector<72x4xf32>
    %c8 = arith.constant 8 : index
    %c0_9 = arith.constant 0 : index
    %8 = vector.load %arg2[%c8, %c0_9] : memref<36x8xf32, #tpu.memory_space<vmem>>, vector<4x8xf32>
    %cst_10 = arith.constant dense<0.000000e+00> : vector<72x8xf32>
    %9 = tpu.matmul %7, %8, %cst_10 {dimension_numbers = #tpu.dot_dimension_numbers<[1], [0], [0], [1], [0, 0, 1, 1], [], []>} : vector<72x4xf32>, vector<4x8xf32>, vector<72x8xf32> -> vector<72x8xf32>
    %10 = arith.addf %5, %9 : vector<72x8xf32>
    %c0_11 = arith.constant 0 : index
    %c1_12 = arith.constant 1 : index
    %c0_13 = arith.constant 0 : index
    %c0_14 = arith.constant 0 : index
    %11 = vector.load %arg1[%c0_11, %c1_12, %c0_13, %c0_14] : memref<1x2x90x8xf32, #tpu.memory_space<vmem>>, vector<1x1x72x8xf32>
    %12 = vector.shape_cast %11 : vector<1x1x72x8xf32> to vector<72x8xf32>
    %c12 = arith.constant 12 : index
    %c0_15 = arith.constant 0 : index
    %13 = vector.load %arg2[%c12, %c0_15] : memref<36x8xf32, #tpu.memory_space<vmem>>, vector<8x8xf32>
    %cst_16 = arith.constant dense<0.000000e+00> : vector<72x8xf32>
    %14 = tpu.matmul %12, %13, %cst_16 {dimension_numbers = #tpu.dot_dimension_numbers<[1], [0], [0], [1], [0, 0, 1, 1], [], []>} : vector<72x8xf32>, vector<8x8xf32>, vector<72x8xf32> -> vector<72x8xf32>
    %15 = arith.addf %10, %14 : vector<72x8xf32>
    %c0_17 = arith.constant 0 : index
    %c1_18 = arith.constant 1 : index
    %c1_19 = arith.constant 1 : index
    %c0_20 = arith.constant 0 : index
    %16 = vector.load %arg1[%c0_17, %c1_18, %c1_19, %c0_20] : memref<1x2x90x8xf32, #tpu.memory_space<vmem>>, vector<1x1x72x4xf32>
    %17 = vector.shape_cast %16 : vector<1x1x72x4xf32> to vector<72x4xf32>
    %c20 = arith.constant 20 : index
    %c0_21 = arith.constant 0 : index
    %18 = vector.load %arg2[%c20, %c0_21] : memref<36x8xf32, #tpu.memory_space<vmem>>, vector<4x8xf32>
    %cst_22 = arith.constant dense<0.000000e+00> : vector<72x8xf32>
    %19 = tpu.matmul %17, %18, %cst_22 {dimension_numbers = #tpu.dot_dimension_numbers<[1], [0], [0], [1], [0, 0, 1, 1], [], []>} : vector<72x4xf32>, vector<4x8xf32>, vector<72x8xf32> -> vector<72x8xf32>
    %20 = arith.addf %15, %19 : vector<72x8xf32>
    %c0_23 = arith.constant 0 : index
    %c0_24 = arith.constant 0 : index
    %c9 = arith.constant 9 : index
    %c0_25 = arith.constant 0 : index
    %21 = vector.load %arg1[%c0_23, %c0_24, %c9, %c0_25] : memref<1x2x90x8xf32, #tpu.memory_space<vmem>>, vector<1x1x72x8xf32>
    %22 = vector.shape_cast %21 : vector<1x1x72x8xf32> to vector<72x8xf32>
    %c24 = arith.constant 24 : index
    %c0_26 = arith.constant 0 : index
    %23 = vector.load %arg2[%c24, %c0_26] : memref<36x8xf32, #tpu.memory_space<vmem>>, vector<8x8xf32>
    %cst_27 = arith.constant dense<0.000000e+00> : vector<72x8xf32>
    %24 = tpu.matmul %22, %23, %cst_27 {dimension_numbers = #tpu.dot_dimension_numbers<[1], [0], [0], [1], [0, 0, 1, 1], [], []>} : vector<72x8xf32>, vector<8x8xf32>, vector<72x8xf32> -> vector<72x8xf32>
    %25 = arith.addf %20, %24 : vector<72x8xf32>
    %c0_28 = arith.constant 0 : index
    %c0_29 = arith.constant 0 : index
    %c10 = arith.constant 10 : index
    %c0_30 = arith.constant 0 : index
    %26 = vector.load %arg1[%c0_28, %c0_29, %c10, %c0_30] : memref<1x2x90x8xf32, #tpu.memory_space<vmem>>, vector<1x1x72x4xf32>
    %27 = vector.shape_cast %26 : vector<1x1x72x4xf32> to vector<72x4xf32>
    %c32 = arith.constant 32 : index
    %c0_31 = arith.constant 0 : index
    %28 = vector.load %arg2[%c32, %c0_31] : memref<36x8xf32, #tpu.memory_space<vmem>>, vector<4x8xf32>
    %cst_32 = arith.constant dense<0.000000e+00> : vector<72x8xf32>
    %29 = tpu.matmul %27, %28, %cst_32 {dimension_numbers = #tpu.dot_dimension_numbers<[1], [0], [0], [1], [0, 0, 1, 1], [], []>} : vector<72x4xf32>, vector<4x8xf32>, vector<72x8xf32> -> vector<72x8xf32>
    %30 = arith.addf %25, %29 : vector<72x8xf32>
    %cst_33 = arith.constant 0.000000e+00 : f32
    %31 = vector.broadcast %cst_33 : f32 to vector<72x8xf32>
    %32 = arith.cmpf oge, %30, %31 : vector<72x8xf32>
    %cst_34 = arith.constant 2.000000e-01 : f32
    %33 = vector.broadcast %cst_34 : f32 to vector<72x8xf32>
    %34 = arith.mulf %33, %30 : vector<72x8xf32>
    %35 = arith.select %32, %30, %34 : vector<72x8xi1>, vector<72x8xf32>
    %c0_35 = arith.constant 0 : index
    %c0_36 = arith.constant 0 : index
    %c0_37 = arith.constant 0 : index
    %36 = vector.load %arg3[%c0_35, %c0_36, %c0_37] : memref<1x72x8xf32, #tpu.memory_space<vmem>>, vector<1x72x8xf32>
    %37 = vector.shape_cast %36 : vector<1x72x8xf32> to vector<72x8xf32>
    %38 = vector.shape_cast %35 : vector<72x8xf32> to vector<1x72x8xf32>
    tpu.vector_store %arg3[%c0_35, %c0_36, %c0_37], %38 {strides = array<i32>} : memref<1x72x8xf32, #tpu.memory_space<vmem>>, vector<1x72x8xf32>,
    return
  }
  func.func @transform_0(%arg0: i32) -> (i32, i32, i32, i32) {
    %c0_i32 = arith.constant 0 : i32
    %c0_i32_0 = arith.constant 0 : i32
    %c0_i32_1 = arith.constant 0 : i32
    %c0_i32_2 = arith.constant 0 : i32
    return %arg0, %c0_i32, %c0_i32_0, %c0_i32_1 : i32, i32, i32, i32
  }
  func.func @transform_1(%arg0: i32) -> (i32, i32) {
    %c0_i32 = arith.constant 0 : i32
    %c0_i32_0 = arith.constant 0 : i32
    %c0_i32_1 = arith.constant 0 : i32
    return %c0_i32, %c0_i32_0 : i32, i32
  }
  func.func @transform_2(%arg0: i32) -> (i32, i32, i32) {
    %c0_i32 = arith.constant 0 : i32
    %c0_i32_0 = arith.constant 0 : i32
    %c0_i32_1 = arith.constant 0 : i32
    return %arg0, %c0_i32, %c0_i32_0 : i32, i32, i32
  }
}

module attributes {stable_mosaic.version = 11 : i64} {
  func.func @_conv_taps_kernel(%arg0: i32, %arg1: memref<1x2x30x16xf32, #tpu.memory_space<vmem>>, %arg2: memref<72x8xf32, #tpu.memory_space<vmem>>, %arg3: memref<1x20x8xf32, #tpu.memory_space<vmem>>) attributes {dimension_semantics = [#tpu.dimension_semantics<parallel>], iteration_bounds = array<i64: 2>, scalar_prefetch = 0 : i64, scratch_operands = 0 : i64, tpu.core_type = #tpu.core_type<tc>, window_params = [{transform_indices = @transform_0, window_bounds = array<i64: 1, 2, 30, 16>}, {pipeline_mode = #tpu.pipeline_mode<synchronous>, transform_indices = @transform_1, window_bounds = array<i64: 72, 8>}, {transform_indices = @transform_2, window_bounds = array<i64: 1, 20, 8>}]} {
    %cst = arith.constant 0.000000e+00 : f32
    %0 = vector.broadcast %cst : f32 to vector<20x8xf32>
    %c0 = arith.constant 0 : index
    %c0_0 = arith.constant 0 : index
    %c0_1 = arith.constant 0 : index
    %c0_2 = arith.constant 0 : index
    %1 = vector.load %arg1[%c0, %c0_0, %c0_1, %c0_2] : memref<1x2x30x16xf32, #tpu.memory_space<vmem>>, vector<1x1x20x16xf32>
    %2 = vector.shape_cast %1 : vector<1x1x20x16xf32> to vector<20x16xf32>
    %c0_3 = arith.constant 0 : index
    %c0_4 = arith.constant 0 : index
    %3 = vector.load %arg2[%c0_3, %c0_4] : memref<72x8xf32, #tpu.memory_space<vmem>>, vector<16x8xf32>
    %cst_5 = arith.constant dense<0.000000e+00> : vector<20x8xf32>
    %4 = tpu.matmul %2, %3, %cst_5 {dimension_numbers = #tpu.dot_dimension_numbers<[1], [0], [0], [1], [0, 0, 1, 1], [], []>} : vector<20x16xf32>, vector<16x8xf32>, vector<20x8xf32> -> vector<20x8xf32>
    %5 = arith.addf %0, %4 : vector<20x8xf32>
    %c0_6 = arith.constant 0 : index
    %c0_7 = arith.constant 0 : index
    %c1 = arith.constant 1 : index
    %c0_8 = arith.constant 0 : index
    %6 = vector.load %arg1[%c0_6, %c0_7, %c1, %c0_8] : memref<1x2x30x16xf32, #tpu.memory_space<vmem>>, vector<1x1x20x8xf32>
    %7 = vector.shape_cast %6 : vector<1x1x20x8xf32> to vector<20x8xf32>
    %c16 = arith.constant 16 : index
    %c0_9 = arith.constant 0 : index
    %8 = vector.load %arg2[%c16, %c0_9] : memref<72x8xf32, #tpu.memory_space<vmem>>, vector<8x8xf32>
    %cst_10 = arith.constant dense<0.000000e+00> : vector<20x8xf32>
    %9 = tpu.matmul %7, %8, %cst_10 {dimension_numbers = #tpu.dot_dimension_numbers<[1], [0], [0], [1], [0, 0, 1, 1], [], []>} : vector<20x8xf32>, vector<8x8xf32>, vector<20x8xf32> -> vector<20x8xf32>
    %10 = arith.addf %5, %9 : vector<20x8xf32>
    %c0_11 = arith.constant 0 : index
    %c1_12 = arith.constant 1 : index
    %c0_13 = arith.constant 0 : index
    %c0_14 = arith.constant 0 : index
    %11 = vector.load %arg1[%c0_11, %c1_12, %c0_13, %c0_14] : memref<1x2x30x16xf32, #tpu.memory_space<vmem>>, vector<1x1x20x16xf32>
    %12 = vector.shape_cast %11 : vector<1x1x20x16xf32> to vector<20x16xf32>
    %c24 = arith.constant 24 : index
    %c0_15 = arith.constant 0 : index
    %13 = vector.load %arg2[%c24, %c0_15] : memref<72x8xf32, #tpu.memory_space<vmem>>, vector<16x8xf32>
    %cst_16 = arith.constant dense<0.000000e+00> : vector<20x8xf32>
    %14 = tpu.matmul %12, %13, %cst_16 {dimension_numbers = #tpu.dot_dimension_numbers<[1], [0], [0], [1], [0, 0, 1, 1], [], []>} : vector<20x16xf32>, vector<16x8xf32>, vector<20x8xf32> -> vector<20x8xf32>
    %15 = arith.addf %10, %14 : vector<20x8xf32>
    %c0_17 = arith.constant 0 : index
    %c1_18 = arith.constant 1 : index
    %c1_19 = arith.constant 1 : index
    %c0_20 = arith.constant 0 : index
    %16 = vector.load %arg1[%c0_17, %c1_18, %c1_19, %c0_20] : memref<1x2x30x16xf32, #tpu.memory_space<vmem>>, vector<1x1x20x8xf32>
    %17 = vector.shape_cast %16 : vector<1x1x20x8xf32> to vector<20x8xf32>
    %c40 = arith.constant 40 : index
    %c0_21 = arith.constant 0 : index
    %18 = vector.load %arg2[%c40, %c0_21] : memref<72x8xf32, #tpu.memory_space<vmem>>, vector<8x8xf32>
    %cst_22 = arith.constant dense<0.000000e+00> : vector<20x8xf32>
    %19 = tpu.matmul %17, %18, %cst_22 {dimension_numbers = #tpu.dot_dimension_numbers<[1], [0], [0], [1], [0, 0, 1, 1], [], []>} : vector<20x8xf32>, vector<8x8xf32>, vector<20x8xf32> -> vector<20x8xf32>
    %20 = arith.addf %15, %19 : vector<20x8xf32>
    %c0_23 = arith.constant 0 : index
    %c0_24 = arith.constant 0 : index
    %c5 = arith.constant 5 : index
    %c0_25 = arith.constant 0 : index
    %21 = vector.load %arg1[%c0_23, %c0_24, %c5, %c0_25] : memref<1x2x30x16xf32, #tpu.memory_space<vmem>>, vector<1x1x20x16xf32>
    %22 = vector.shape_cast %21 : vector<1x1x20x16xf32> to vector<20x16xf32>
    %c48 = arith.constant 48 : index
    %c0_26 = arith.constant 0 : index
    %23 = vector.load %arg2[%c48, %c0_26] : memref<72x8xf32, #tpu.memory_space<vmem>>, vector<16x8xf32>
    %cst_27 = arith.constant dense<0.000000e+00> : vector<20x8xf32>
    %24 = tpu.matmul %22, %23, %cst_27 {dimension_numbers = #tpu.dot_dimension_numbers<[1], [0], [0], [1], [0, 0, 1, 1], [], []>} : vector<20x16xf32>, vector<16x8xf32>, vector<20x8xf32> -> vector<20x8xf32>
    %25 = arith.addf %20, %24 : vector<20x8xf32>
    %c0_28 = arith.constant 0 : index
    %c0_29 = arith.constant 0 : index
    %c6 = arith.constant 6 : index
    %c0_30 = arith.constant 0 : index
    %26 = vector.load %arg1[%c0_28, %c0_29, %c6, %c0_30] : memref<1x2x30x16xf32, #tpu.memory_space<vmem>>, vector<1x1x20x8xf32>
    %27 = vector.shape_cast %26 : vector<1x1x20x8xf32> to vector<20x8xf32>
    %c64 = arith.constant 64 : index
    %c0_31 = arith.constant 0 : index
    %28 = vector.load %arg2[%c64, %c0_31] : memref<72x8xf32, #tpu.memory_space<vmem>>, vector<8x8xf32>
    %cst_32 = arith.constant dense<0.000000e+00> : vector<20x8xf32>
    %29 = tpu.matmul %27, %28, %cst_32 {dimension_numbers = #tpu.dot_dimension_numbers<[1], [0], [0], [1], [0, 0, 1, 1], [], []>} : vector<20x8xf32>, vector<8x8xf32>, vector<20x8xf32> -> vector<20x8xf32>
    %30 = arith.addf %25, %29 : vector<20x8xf32>
    %cst_33 = arith.constant 0.000000e+00 : f32
    %31 = vector.broadcast %cst_33 : f32 to vector<20x8xf32>
    %32 = arith.cmpf oge, %30, %31 : vector<20x8xf32>
    %cst_34 = arith.constant 2.000000e-01 : f32
    %33 = vector.broadcast %cst_34 : f32 to vector<20x8xf32>
    %34 = arith.mulf %33, %30 : vector<20x8xf32>
    %35 = arith.select %32, %30, %34 : vector<20x8xi1>, vector<20x8xf32>
    %c0_35 = arith.constant 0 : index
    %c0_36 = arith.constant 0 : index
    %c0_37 = arith.constant 0 : index
    %36 = vector.load %arg3[%c0_35, %c0_36, %c0_37] : memref<1x20x8xf32, #tpu.memory_space<vmem>>, vector<1x20x8xf32>
    %37 = vector.shape_cast %36 : vector<1x20x8xf32> to vector<20x8xf32>
    %38 = vector.shape_cast %35 : vector<20x8xf32> to vector<1x20x8xf32>
    tpu.vector_store %arg3[%c0_35, %c0_36, %c0_37], %38 {strides = array<i32>} : memref<1x20x8xf32, #tpu.memory_space<vmem>>, vector<1x20x8xf32>,
    return
  }
  func.func @transform_0(%arg0: i32) -> (i32, i32, i32, i32) {
    %c0_i32 = arith.constant 0 : i32
    %c0_i32_0 = arith.constant 0 : i32
    %c0_i32_1 = arith.constant 0 : i32
    %c0_i32_2 = arith.constant 0 : i32
    return %arg0, %c0_i32, %c0_i32_0, %c0_i32_1 : i32, i32, i32, i32
  }
  func.func @transform_1(%arg0: i32) -> (i32, i32) {
    %c0_i32 = arith.constant 0 : i32
    %c0_i32_0 = arith.constant 0 : i32
    %c0_i32_1 = arith.constant 0 : i32
    return %c0_i32, %c0_i32_0 : i32, i32
  }
  func.func @transform_2(%arg0: i32) -> (i32, i32, i32) {
    %c0_i32 = arith.constant 0 : i32
    %c0_i32_0 = arith.constant 0 : i32
    %c0_i32_1 = arith.constant 0 : i32
    return %arg0, %c0_i32, %c0_i32_0 : i32, i32, i32
  }
}

module attributes {stable_mosaic.version = 11 : i64} {
  func.func @_conv_taps_kernel(%arg0: i32, %arg1: memref<1x1x48x8xf32, #tpu.memory_space<vmem>>, %arg2: memref<72x4xf32, #tpu.memory_space<vmem>>, %arg3: memref<1x24x4xf32, #tpu.memory_space<vmem>>) attributes {dimension_semantics = [#tpu.dimension_semantics<parallel>], iteration_bounds = array<i64: 2>, scalar_prefetch = 0 : i64, scratch_operands = 0 : i64, tpu.core_type = #tpu.core_type<tc>, window_params = [{transform_indices = @transform_0, window_bounds = array<i64: 1, 1, 48, 8>}, {pipeline_mode = #tpu.pipeline_mode<synchronous>, transform_indices = @transform_1, window_bounds = array<i64: 72, 4>}, {transform_indices = @transform_2, window_bounds = array<i64: 1, 24, 4>}]} {
    %cst = arith.constant 0.000000e+00 : f32
    %0 = vector.broadcast %cst : f32 to vector<24x4xf32>
    %c0 = arith.constant 0 : index
    %c0_0 = arith.constant 0 : index
    %c0_1 = arith.constant 0 : index
    %c0_2 = arith.constant 0 : index
    %1 = vector.load %arg1[%c0, %c0_0, %c0_1, %c0_2] : memref<1x1x48x8xf32, #tpu.memory_space<vmem>>, vector<1x1x24x8xf32>
    %2 = vector.shape_cast %1 : vector<1x1x24x8xf32> to vector<24x8xf32>
    %c0_3 = arith.constant 0 : index
    %c0_4 = arith.constant 0 : index
    %3 = vector.load %arg2[%c0_3, %c0_4] : memref<72x4xf32, #tpu.memory_space<vmem>>, vector<8x4xf32>
    %cst_5 = arith.constant dense<0.000000e+00> : vector<24x4xf32>
    %4 = tpu.matmul %2, %3, %cst_5 {dimension_numbers = #tpu.dot_dimension_numbers<[1], [0], [0], [1], [0, 0, 1, 1], [], []>} : vector<24x8xf32>, vector<8x4xf32>, vector<24x4xf32> -> vector<24x4xf32>
    %5 = arith.addf %0, %4 : vector<24x4xf32>
    %c0_6 = arith.constant 0 : index
    %c0_7 = arith.constant 0 : index
    %c1 = arith.constant 1 : index
    %c0_8 = arith.constant 0 : index
    %6 = vector.load %arg1[%c0_6, %c0_7, %c1, %c0_8] : memref<1x1x48x8xf32, #tpu.memory_space<vmem>>, vector<1x1x24x8xf32>
    %7 = vector.shape_cast %6 : vector<1x1x24x8xf32> to vector<24x8xf32>
    %c8 = arith.constant 8 : index
    %c0_9 = arith.constant 0 : index
    %8 = vector.load %arg2[%c8, %c0_9] : memref<72x4xf32, #tpu.memory_space<vmem>>, vector<8x4xf32>
    %cst_10 = arith.constant dense<0.000000e+00> : vector<24x4xf32>
    %9 = tpu.matmul %7, %8, %cst_10 {dimension_numbers = #tpu.dot_dimension_numbers<[1], [0], [0], [1], [0, 0, 1, 1], [], []>} : vector<24x8xf32>, vector<8x4xf32>, vector<24x4xf32> -> vector<24x4xf32>
    %10 = arith.addf %5, %9 : vector<24x4xf32>
    %c0_11 = arith.constant 0 : index
    %c0_12 = arith.constant 0 : index
    %c2 = arith.constant 2 : index
    %c0_13 = arith.constant 0 : index
    %11 = vector.load %arg1[%c0_11, %c0_12, %c2, %c0_13] : memref<1x1x48x8xf32, #tpu.memory_space<vmem>>, vector<1x1x24x8xf32>
    %12 = vector.shape_cast %11 : vector<1x1x24x8xf32> to vector<24x8xf32>
    %c16 = arith.constant 16 : index
    %c0_14 = arith.constant 0 : index
    %13 = vector.load %arg2[%c16, %c0_14] : memref<72x4xf32, #tpu.memory_space<vmem>>, vector<8x4xf32>
    %cst_15 = arith.constant dense<0.000000e+00> : vector<24x4xf32>
    %14 = tpu.matmul %12, %13, %cst_15 {dimension_numbers = #tpu.dot_dimension_numbers<[1], [0], [0], [1], [0, 0, 1, 1], [], []>} : vector<24x8xf32>, vector<8x4xf32>, vector<24x4xf32> -> vector<24x4xf32>
    %15 = arith.addf %10, %14 : vector<24x4xf32>
    %c0_16 = arith.constant 0 : index
    %c0_17 = arith.constant 0 : index
    %c6 = arith.constant 6 : index
    %c0_18 = arith.constant 0 : index
    %16 = vector.load %arg1[%c0_16, %c0_17, %c6, %c0_18] : memref<1x1x48x8xf32, #tpu.memory_space<vmem>>, vector<1x1x24x8xf32>
    %17 = vector.shape_cast %16 : vector<1x1x24x8xf32> to vector<24x8xf32>
    %c24 = arith.constant 24 : index
    %c0_19 = arith.constant 0 : index
    %18 = vector.load %arg2[%c24, %c0_19] : memref<72x4xf32, #tpu.memory_space<vmem>>, vector<8x4xf32>
    %cst_20 = arith.constant dense<0.000000e+00> : vector<24x4xf32>
    %19 = tpu.matmul %17, %18, %cst_20 {dimension_numbers = #tpu.dot_dimension_numbers<[1], [0], [0], [1], [0, 0, 1, 1], [], []>} : vector<24x8xf32>, vector<8x4xf32>, vector<24x4xf32> -> vector<24x4xf32>
    %20 = arith.addf %15, %19 : vector<24x4xf32>
    %c0_21 = arith.constant 0 : index
    %c0_22 = arith.constant 0 : index
    %c7 = arith.constant 7 : index
    %c0_23 = arith.constant 0 : index
    %21 = vector.load %arg1[%c0_21, %c0_22, %c7, %c0_23] : memref<1x1x48x8xf32, #tpu.memory_space<vmem>>, vector<1x1x24x8xf32>
    %22 = vector.shape_cast %21 : vector<1x1x24x8xf32> to vector<24x8xf32>
    %c32 = arith.constant 32 : index
    %c0_24 = arith.constant 0 : index
    %23 = vector.load %arg2[%c32, %c0_24] : memref<72x4xf32, #tpu.memory_space<vmem>>, vector<8x4xf32>
    %cst_25 = arith.constant dense<0.000000e+00> : vector<24x4xf32>
    %24 = tpu.matmul %22, %23, %cst_25 {dimension_numbers = #tpu.dot_dimension_numbers<[1], [0], [0], [1], [0, 0, 1, 1], [], []>} : vector<24x8xf32>, vector<8x4xf32>, vector<24x4xf32> -> vector<24x4xf32>
    %25 = arith.addf %20, %24 : vector<24x4xf32>
    %c0_26 = arith.constant 0 : index
    %c0_27 = arith.constant 0 : index
    %c8_28 = arith.constant 8 : index
    %c0_29 = arith.constant 0 : index
    %26 = vector.load %arg1[%c0_26, %c0_27, %c8_28, %c0_29] : memref<1x1x48x8xf32, #tpu.memory_space<vmem>>, vector<1x1x24x8xf32>
    %27 = vector.shape_cast %26 : vector<1x1x24x8xf32> to vector<24x8xf32>
    %c40 = arith.constant 40 : index
    %c0_30 = arith.constant 0 : index
    %28 = vector.load %arg2[%c40, %c0_30] : memref<72x4xf32, #tpu.memory_space<vmem>>, vector<8x4xf32>
    %cst_31 = arith.constant dense<0.000000e+00> : vector<24x4xf32>
    %29 = tpu.matmul %27, %28, %cst_31 {dimension_numbers = #tpu.dot_dimension_numbers<[1], [0], [0], [1], [0, 0, 1, 1], [], []>} : vector<24x8xf32>, vector<8x4xf32>, vector<24x4xf32> -> vector<24x4xf32>
    %30 = arith.addf %25, %29 : vector<24x4xf32>
    %c0_32 = arith.constant 0 : index
    %c0_33 = arith.constant 0 : index
    %c12 = arith.constant 12 : index
    %c0_34 = arith.constant 0 : index
    %31 = vector.load %arg1[%c0_32, %c0_33, %c12, %c0_34] : memref<1x1x48x8xf32, #tpu.memory_space<vmem>>, vector<1x1x24x8xf32>
    %32 = vector.shape_cast %31 : vector<1x1x24x8xf32> to vector<24x8xf32>
    %c48 = arith.constant 48 : index
    %c0_35 = arith.constant 0 : index
    %33 = vector.load %arg2[%c48, %c0_35] : memref<72x4xf32, #tpu.memory_space<vmem>>, vector<8x4xf32>
    %cst_36 = arith.constant dense<0.000000e+00> : vector<24x4xf32>
    %34 = tpu.matmul %32, %33, %cst_36 {dimension_numbers = #tpu.dot_dimension_numbers<[1], [0], [0], [1], [0, 0, 1, 1], [], []>} : vector<24x8xf32>, vector<8x4xf32>, vector<24x4xf32> -> vector<24x4xf32>
    %35 = arith.addf %30, %34 : vector<24x4xf32>
    %c0_37 = arith.constant 0 : index
    %c0_38 = arith.constant 0 : index
    %c13 = arith.constant 13 : index
    %c0_39 = arith.constant 0 : index
    %36 = vector.load %arg1[%c0_37, %c0_38, %c13, %c0_39] : memref<1x1x48x8xf32, #tpu.memory_space<vmem>>, vector<1x1x24x8xf32>
    %37 = vector.shape_cast %36 : vector<1x1x24x8xf32> to vector<24x8xf32>
    %c56 = arith.constant 56 : index
    %c0_40 = arith.constant 0 : index
    %38 = vector.load %arg2[%c56, %c0_40] : memref<72x4xf32, #tpu.memory_space<vmem>>, vector<8x4xf32>
    %cst_41 = arith.constant dense<0.000000e+00> : vector<24x4xf32>
    %39 = tpu.matmul %37, %38, %cst_41 {dimension_numbers = #tpu.dot_dimension_numbers<[1], [0], [0], [1], [0, 0, 1, 1], [], []>} : vector<24x8xf32>, vector<8x4xf32>, vector<24x4xf32> -> vector<24x4xf32>
    %40 = arith.addf %35, %39 : vector<24x4xf32>
    %c0_42 = arith.constant 0 : index
    %c0_43 = arith.constant 0 : index
    %c14 = arith.constant 14 : index
    %c0_44 = arith.constant 0 : index
    %41 = vector.load %arg1[%c0_42, %c0_43, %c14, %c0_44] : memref<1x1x48x8xf32, #tpu.memory_space<vmem>>, vector<1x1x24x8xf32>
    %42 = vector.shape_cast %41 : vector<1x1x24x8xf32> to vector<24x8xf32>
    %c64 = arith.constant 64 : index
    %c0_45 = arith.constant 0 : index
    %43 = vector.load %arg2[%c64, %c0_45] : memref<72x4xf32, #tpu.memory_space<vmem>>, vector<8x4xf32>
    %cst_46 = arith.constant dense<0.000000e+00> : vector<24x4xf32>
    %44 = tpu.matmul %42, %43, %cst_46 {dimension_numbers = #tpu.dot_dimension_numbers<[1], [0], [0], [1], [0, 0, 1, 1], [], []>} : vector<24x8xf32>, vector<8x4xf32>, vector<24x4xf32> -> vector<24x4xf32>
    %45 = arith.addf %40, %44 : vector<24x4xf32>
    %c0_47 = arith.constant 0 : index
    %c0_48 = arith.constant 0 : index
    %c0_49 = arith.constant 0 : index
    %46 = vector.load %arg3[%c0_47, %c0_48, %c0_49] : memref<1x24x4xf32, #tpu.memory_space<vmem>>, vector<1x24x4xf32>
    %47 = vector.shape_cast %46 : vector<1x24x4xf32> to vector<24x4xf32>
    %48 = vector.shape_cast %45 : vector<24x4xf32> to vector<1x24x4xf32>
    tpu.vector_store %arg3[%c0_47, %c0_48, %c0_49], %48 {strides = array<i32>} : memref<1x24x4xf32, #tpu.memory_space<vmem>>, vector<1x24x4xf32>,
    return
  }
  func.func @transform_0(%arg0: i32) -> (i32, i32, i32, i32) {
    %c0_i32 = arith.constant 0 : i32
    %c0_i32_0 = arith.constant 0 : i32
    %c0_i32_1 = arith.constant 0 : i32
    %c0_i32_2 = arith.constant 0 : i32
    return %arg0, %c0_i32, %c0_i32_0, %c0_i32_1 : i32, i32, i32, i32
  }
  func.func @transform_1(%arg0: i32) -> (i32, i32) {
    %c0_i32 = arith.constant 0 : i32
    %c0_i32_0 = arith.constant 0 : i32
    %c0_i32_1 = arith.constant 0 : i32
    return %c0_i32, %c0_i32_0 : i32, i32
  }
  func.func @transform_2(%arg0: i32) -> (i32, i32, i32) {
    %c0_i32 = arith.constant 0 : i32
    %c0_i32_0 = arith.constant 0 : i32
    %c0_i32_1 = arith.constant 0 : i32
    return %arg0, %c0_i32, %c0_i32_0 : i32, i32, i32
  }
}

</mosaic_0001>

<bundles_post_ra>
// kernel: down_block_drn_forward.4
= control target key start
LH: loop header
LB: loop body
LE: loop exit
PB: predicated region body
PF: predicated region fallthrough
CT: control target
= control target key end

     0   :  { %s996_s9 = smov 0   ;;  %s1123_s0 = inlined_call_operand.vmem [shape: f32[2,2,30,16], index: 0, kind: input, shape index: {}]   ;;  %s1124_s1 = inlined_call_operand.vmem [shape: f32[72,8], index: 1, kind: input, shape index: {}]   ;;  %s1125_s2 = inlined_call_operand.vmem [shape: f32[2,20,8], index: 2, kind: output, shape index: {}]  }
   0x1 LB: > { %s788_s10 = sadd.s32 4294967295, %s976_s9   ;;  %p792_p0 = scmp.ge.s32.totalorder %s976_s9, 1  ;;  %s976_s9 = sphi %s996_s9, %s12_s9  }
   0x2   : > { %p112_p1 = scmp.lt.s32.totalorder %s976_s9, 3 }
   0x4   : > { %p113_p2 = pnand %p792_p0, %p112_p1 }
   0x5   : > { %v152_v0 = vld [vmem:[%s1124_s1 + $0x10] sm:$0xff] (!%p113_p2)  ;;  %v434_v1 = vld [vmem:[%s1124_s1 + $0x28] sm:$0xff] (!%p113_p2)  ;;  %p134_p3 = scmp.lt.s32.totalorder (!%p113_p2), %s788_s10, 1  ;;  %v978_v2 = vmov (!%p113_p2), 0.0   ;;  %v147_v3 = vld [vmem:[%s1124_s1] sm:$0xff] (!%p113_p2)  ;;  %vm979_vm0 = vmmov (!%p113_p2), 0  }
   0x6   : > { %116 = sbr.rel (%p113_p2) target bundleno = 268 (0x10c), region = 28  ;;  %850 = vmatprep.subr.mxu1 (!%p113_p2), %v978_v2  ;;  %887 = vmatprep.subr.mxu0 (!%p113_p2), %v978_v2  ;;  %v148_v4 = vld [vmem:[%s1124_s1 + $0x8] sm:$0xff] (!%p113_p2)  ;;  %v530_v5 = vld [vmem:[%s1124_s1 + $0x30] sm:$0xff] (!%p113_p2)  ;;  %v531_v6 = vld [vmem:[%s1124_s1 + $0x38] sm:$0xff] (!%p113_p2)  ;;  %v980_v7 = vmov (!%p113_p2), 0.0|0.0   ;;  %vm153_vm1 = vcmask (!%p113_p2), 64512  }
   0x7   : > { %851 = vmatpush3.msra.mxu1 (!%p113_p2), %v152_v0  ;;  %888 = vmatpush3.msra.mxu0 (!%p113_p2), %v434_v1  ;;  %v923_v8 = vpack.c.bf16 (!%p113_p2), %v148_v4, %v147_v3  ;;  %v929_v9 = vpack.c.bf16 (!%p113_p2), %v531_v6, %v530_v5  ;;  %v337_v16 = vld [vmem:[%s1124_s1 + $0x18] sm:$0xff] (!%p113_p2)  ;;  %v338_v17 = vld [vmem:[%s1124_s1 + $0x20] sm:$0xff] (!%p113_p2)  ;;  %vm243_vm2 = vcmask (!%p113_p2), 130048   ;;  %vm731_vm6 = vcmask (!%p113_p2), 60416  }
   0x8   : > { %852 = vmatprep.mubr.msk.f32.mxu1 (!%p113_p2), %vm979_vm0, %v978_v2  ;;  %922 = vmatprep.subr.bf16.mxu1 (!%p113_p2), %v980_v7  ;;  %v926_v19 = vpack.c.bf16 (!%p113_p2), %v338_v17, %v337_v16  ;;  %v627_v21 = vld [vmem:[%s1124_s1 + $0x40] sm:$0xff] (!%p113_p2) }
   0x9   : > { %889 = vmatprep.mubr.msk.f32.mxu0 (!%p113_p2), %vm979_vm0, %v978_v2  ;;  %928 = vmatprep.subr.bf16.mxu0 (!%p113_p2), %v980_v7 }
   0xd   : > { %s1127_s10 = smov (!%p134_p3, %s788_s10), 1 }
   0xe   : > { %s822_s23 = sshll.u32 %s1127_s10, 6  ;;  %s958_s5 = smul.u32 24, %s1127_s10 }
   0xf   : > { %s1034_s26 = scalar_lea.vmem %s1123_s0, %s822_s23 }
  0x10   : > { %v149_v10 = vld [vmem:[%s1034_s26 + $0x1] sm:$0xff]  ;;  %v150_v12 = vld [vmem:[%s1034_s26 + $0x9] sm:$0xff]  ;;  %v151_v14 = vld [vmem:[%s1034_s26 + $0x11] sm:$0xf]  ;;  %s143_s8 = scalar_lea.vmem %s1125_s2, %s958_s5 }
  0x11   : > { %v808_v11 = vld [vmem:[%s1034_s26 + $0x21] sm:$0xff]  ;;  %853 = vmatmul.mubr.msk.f32.vlgmr.msra.gmra.mrb[0].mxu1 %vm153_vm1, %v149_v10  ;;  %v809_v13 = vld [vmem:[%s1034_s26 + $0x29] sm:$0xff]  ;;  %v810_v15 = vld [vmem:[%s1034_s26 + $0x31] sm:$0xf] }
  0x12   : > { %890 = vmatmul.mubr.msk.f32.vlgmr.msra.gmra.mrb[0].mxu0 %vm153_vm1, %v808_v11  ;;  %924 = vmatpush3.bf16.msra.mxu1 %v923_v8  ;;  %v144_v18 = vld [vmem:[%s1034_s26] sm:$0xff]  ;;  %v145_v22 = vld [vmem:[%s1034_s26 + $0x8] sm:$0xff]  ;;  %v146_v24 = vld [vmem:[%s1034_s26 + $0x10] sm:$0xf] }
  0x13   : > { %930 = vmatpush3.bf16.msra.mxu0 %v929_v9  ;;  %855 = vmatprep.mubr.msk.f32.mxu1 %vm979_vm0, %v978_v2  ;;  %v527_v20 = vld [vmem:[%s1034_s26 + $0x5] sm:$0xff]  ;;  %v528_v23 = vld [vmem:[%s1034_s26 + $0xd] sm:$0xff]  ;;  %v529_v25 = vld [vmem:[%s1034_s26 + $0x15] sm:$0xf] }
  0x14   : > { %892 = vmatprep.mubr.msk.f32.mxu0 %vm979_vm0, %v978_v2  ;;  %925 = vmatprep.subr.bf16.mxu1 %v980_v7  ;;  %v802_v26 = vld [vmem:[%s1034_s26 + $0x20] sm:$0xff]  ;;  %v803_v28 = vld [vmem:[%s1034_s26 + $0x28] sm:$0xff]  ;;  %v804_v30 = vld [vmem:[%s1034_s26 + $0x30] sm:$0xf] }
  0x15   : > { %911 = vmatprep.subr.mxu0 %v978_v2  ;;  %856 = vmatmul.mubr.msk.f32.gmra.mrb[2].mxu1 %vm153_vm1, %v150_v12  ;;  %v624_v27 = vld [vmem:[%s1034_s26 + $0x6] sm:$0xff]  ;;  %v625_v29 = vld [vmem:[%s1034_s26 + $0xe] sm:$0xff]  ;;  %v626_v31 = vld [vmem:[%s1034_s26 + $0x16] sm:$0xf] }
  0x16   : > { %893 = vmatmul.mubr.msk.f32.gmra.mrb[2].mxu0 %vm153_vm1, %v809_v13  ;;  %858 = vmatprep.mubr.msk.f32.mxu1 %vm979_vm0, %v978_v2 }
  0x17   : > { %895 = vmatprep.mubr.msk.f32.mxu0 %vm979_vm0, %v978_v2 }
  0x19   : > { %859 = vmatmul.mubr.msk.f32.gmra.mrb[4].mxu1 %vm153_vm1, %v151_v14 }
  0x1a   : > { %896 = vmatmul.mubr.msk.f32.gmra.mrb[4].mxu0 %vm153_vm1, %v810_v15  ;;  %865 = vmatprep.mubr.msk.f32.mxu1 %vm979_vm0, %v978_v2 }
  0x1b   : > { %902 = vmatprep.mubr.msk.f32.mxu0 %vm979_vm0, %v978_v2 }
  0x1d   : > { %866 = vmatmul.mubr.msk.f32.vlgmr.msra.gmra.mrb[0].mxu1 %vm243_vm2, %v144_v18 }
  0x1e   : > { %903 = vmatmul.mubr.msk.f32.vlgmr.msra.gmra.mrb[0].mxu0 %vm243_vm2, %v527_v20  ;;  %927 = vmatpush3.bf16.msra.mxu1 %v926_v19 }
  0x1f   : > { %912 = vmatpush3.msra.mxu0 %v627_v21  ;;  %868 = vmatprep.mubr.msk.f32.mxu1 %vm979_vm0, %v978_v2 }
  0x20   : > { %905 = vmatprep.mubr.msk.f32.mxu0 %vm979_vm0, %v978_v2 }
  0x21   : > { %869 = vmatmul.mubr.msk.f32.gmra.mrb[2].mxu1 %vm243_vm2, %v145_v22 }
  0x22   : > { %906 = vmatmul.mubr.msk.f32.gmra.mrb[2].mxu0 %vm243_vm2, %v528_v23  ;;  %871 = vmatprep.mubr.msk.f32.mxu1 %vm979_vm0, %v978_v2 }
  0x23   : > { %908 = vmatprep.mubr.msk.f32.mxu0 %vm979_vm0, %v978_v2 }
  0x25   : > { %872 = vmatmul.mubr.msk.f32.gmra.mrb[4].mxu1 %vm243_vm2, %v146_v24 }
  0x26   : > { %909 = vmatmul.mubr.msk.f32.gmra.mrb[4].mxu0 %vm243_vm2, %v529_v25  ;;  %878 = vmatprep.mubr.msk.f32.mxu1 %vm979_vm0, %v978_v2 }
  0x27   : > { %913 = vmatprep.mubr.msk.f32.mxu0 %vm979_vm0, %v978_v2 }
  0x29   : > { %879 = vmatmul.mubr.msk.f32.vlgmr.msra.gmra.mrb[0].mxu1 %vm243_vm2, %v802_v26 }
  0x2a   : > { %914 = vmatmul.mubr.msk.f32.vlgmr.msra.gmra.mrb[0].mxu0 %vm153_vm1, %v624_v27  ;;  %881 = vmatprep.mubr.msk.f32.mxu1 %vm979_vm0, %v978_v2 }
  0x2b   : > { %916 = vmatprep.mubr.msk.f32.mxu0 %vm979_vm0, %v978_v2 }
  0x2d   : > { %882 = vmatmul.mubr.msk.f32.gmra.mrb[2].mxu1 %vm243_vm2, %v803_v28 }
  0x2e   : > { %917 = vmatmul.mubr.msk.f32.gmra.mrb[2].mxu0 %vm153_vm1, %v625_v29  ;;  %884 = vmatprep.mubr.msk.f32.mxu1 %vm979_vm0, %v978_v2 }
  0x2f   : > { %919 = vmatprep.mubr.msk.f32.mxu0 %vm979_vm0, %v978_v2 }
  0x31   : > { %885 = vmatmul.mubr.msk.f32.gmra.mrb[4].mxu1 %vm243_vm2, %v804_v30 }
  0x32   : > { %920 = vmatmul.mubr.msk.f32.gmra.mrb[4].mxu0 %vm153_vm1, %v626_v31 }
  0xfc   : > { %v414_v32 = vpop.f32.mrb[0].mxu1 }
  0xfd   : > { %v703_v33 = vpop.f32.mrb[0].mxu0  ;;  %v880_v35 = vpop.f32.mrb[1].mxu1 }
  0xfe   : > { %v931_v34 = vadd.f32 %v703_v33, %v414_v32  ;;  %v915_v36 = vpop.f32.mrb[1].mxu0 }
 0x100   : > { %vm720_vm3 = vcmp.ge.f32.partialorder %v931_v34, 0.0  ;;  %v723_v37 = vmul.f32 0.2, %v931_v34  ;;  %v419_v38 = vpop.f32.mrb[2].mxu1 }
 0x101   : > { %v708_v39 = vpop.f32.mrb[2].mxu0  ;;  %v883_v42 = vpop.f32.mrb[3].mxu1 }
 0x102   : > { %v726_v40 = vsel %vm720_vm3, %v931_v34, %v723_v37  ;;  %v932_v41 = vadd.f32 %v708_v39, %v419_v38  ;;  %v918_v43 = vpop.f32.mrb[3].mxu0 }
 0x103   : > { %729 = vst.msk [vmem:[%s143_s8] sm:$0xff] %vm153_vm1, %v726_v40 }
 0x104   : > { %vm721_vm4 = vcmp.ge.f32.partialorder %v932_v41, 0.0  ;;  %v724_v44 = vmul.f32 0.2, %v932_v41  ;;  %v424_v45 = vpop.f32.mrb[4].mxu1 }
 0x105   : > { %v713_v46 = vpop.f32.mrb[4].mxu0  ;;  %v886_v49 = vpop.f32.mrb[5].mxu1 }
 0x106   : > { %v727_v47 = vsel %vm721_vm4, %v932_v41, %v724_v44  ;;  %v933_v48 = vadd.f32 %v713_v46, %v424_v45  ;;  %v921_v50 = vpop.f32.mrb[5].mxu0 }
 0x107   : > { %730 = vst.msk [vmem:[%s143_s8 + $0x8] sm:$0xff] %vm153_vm1, %v727_v47 }
 0x108   : > { %vm722_vm5 = vcmp.ge.f32.partialorder %v933_v48, 0.0  ;;  %v725_v51 = vmul.f32 0.2, %v933_v48 }
 0x10a   : > { %v728_v52 = vsel %vm722_vm5, %v933_v48, %v725_v51 }
 0x10b   : > { %732 = vst.msk [vmem:[%s143_s8 + $0x10] sm:$0xf] %vm731_vm6, %v728_v52 }
 0x10c PF: > { %s12_s9 = sadd.s32 1, %s976_s9  }
 0x10d   : > { %p9_p4 = scmp.ge.s32.totalorder %s12_s9, 4  }
 0x10f   :  { %11 = sbr.rel (!%p9_p4) target bundleno = 1 (0x1), region = 59 }

// kernel: down_block_drn_forward.3
= control target key start
LH: loop header
LB: loop body
LE: loop exit
PB: predicated region body
PF: predicated region fallthrough
CT: control target
= control target key end

     0   :  { %s1602_s9 = smov 0   ;;  %s1880_s0 = inlined_call_operand.vmem [shape: f32[2,2,90,8], index: 0, kind: input, shape index: {}]   ;;  %s1881_s1 = inlined_call_operand.vmem [shape: f32[36,8], index: 1, kind: input, shape index: {}]   ;;  %s1882_s2 = inlined_call_operand.vmem [shape: f32[2,72,8], index: 2, kind: output, shape index: {}]  }
   0x1 LB: > { %s1166_s10 = sadd.s32 4294967295, %s1583_s9   ;;  %p1170_p0 = scmp.ge.s32.totalorder %s1583_s9, 1  ;;  %s1583_s9 = sphi %s1602_s9, %s12_s9  }
   0x2   : > { %p112_p1 = scmp.lt.s32.totalorder %s1583_s9, 3 }
   0x4   : > { %p113_p2 = pnand %p1170_p0, %p112_p1 }
   0x5   : > { %v163_v0 = vld [vmem:[%s1881_s1 + $0x8] sm:$0xf] (!%p113_p2)  ;;  %vm192_vm0 = vcmask (!%p113_p2), 1043456   ;;  %v610_v1 = vld [vmem:[%s1881_s1 + $0x14] sm:$0xf] (!%p113_p2)  ;;  %v1585_v2 = vmov (!%p113_p2), 0.0  }
   0x6   : > { %116 = sbr.rel (%p113_p2) target bundleno = 341 (0x155), region = 28  ;;  %1310 = vmatprep.subr.mxu1 (!%p113_p2), %v1585_v2  ;;  %1397 = vmatprep.subr.mxu0 (!%p113_p2), %v1585_v2  ;;  %p134_p3 = scmp.lt.s32.totalorder (!%p113_p2), %s1166_s10, 1  ;;  %vm1586_vm1 = vmmov (!%p113_p2), 0   ;;  %vm164_vm2 = vcmask (!%p113_p2), 31744   ;;  %v153_v3 = vld [vmem:[%s1881_s1] sm:$0xff] (!%p113_p2)  ;;  %v769_v4 = vld [vmem:[%s1881_s1 + $0x18] sm:$0xff] (!%p113_p2) }
   0x7   : > { %1311 = vmatpush3.msk.msra.mxu1 (!%p113_p2), %vm192_vm0, %v163_v0  ;;  %1398 = vmatpush3.msk.msra.mxu0 (!%p113_p2), %vm192_vm0, %v610_v1  ;;  %vm306_vm3 = vcmask (!%p113_p2), 64512   ;;  %v454_v24 = vld [vmem:[%s1881_s1 + $0xc] sm:$0xff] (!%p113_p2)  ;;  %v925_v25 = vld [vmem:[%s1881_s1 + $0x20] sm:$0xf] (!%p113_p2) }
   0x8   : > { %1312 = vmatprep.mubr.msk.f32.mxu1 (!%p113_p2), %vm1586_vm1, %v1585_v2  ;;  %1339 = vmatprep.subr.mxu1 (!%p113_p2), %v1585_v2 }
   0x9   : > { %1399 = vmatprep.mubr.msk.f32.mxu0 (!%p113_p2), %vm1586_vm1, %v1585_v2  ;;  %1426 = vmatprep.subr.mxu0 (!%p113_p2), %v1585_v2 }
   0xd   : > { %s1884_s10 = smov (!%p134_p3, %s1166_s10), 1 }
   0xe   : > { %s1565_s15 = smul.u32 192, %s1884_s10 }
   0xf   : > { %s1566_s27 = smul.u32 72, %s1884_s10 }
  0x10   : > { %s1632_s18 = scalar_lea.vmem %s1880_s0, %s1565_s15 }
  0x11   : > { %v154_v5 = vld [vmem:[%s1632_s18 + $0x1] sm:$0xff]  ;;  %v155_v7 = vld [vmem:[%s1632_s18 + $0x9] sm:$0xff]  ;;  %v156_v9 = vld [vmem:[%s1632_s18 + $0x11] sm:$0xff]  ;;  %s1857_s30 = scalar_lea.vmem %s1882_s2, %s1566_s27 }
  0x12   : > { %v1210_v6 = vld [vmem:[%s1632_s18 + $0x61] sm:$0xff]  ;;  %1313 = vmatmul.mubr.msk.f32.vlgmr.msra.gmra.mrb[0].mxu1 %vm164_vm2, %v154_v5  ;;  %v1211_v8 = vld [vmem:[%s1632_s18 + $0x69] sm:$0xff]  ;;  %v1212_v10 = vld [vmem:[%s1632_s18 + $0x71] sm:$0xff] }
  0x13   : > { %1400 = vmatmul.mubr.msk.f32.vlgmr.msra.gmra.mrb[0].mxu0 %vm164_vm2, %v1210_v6  ;;  %1340 = vmatpush3.msra.mxu1 %v153_v3  ;;  %v157_v11 = vld [vmem:[%s1632_s18 + $0x19] sm:$0xff]  ;;  %v158_v13 = vld [vmem:[%s1632_s18 + $0x21] sm:$0xff]  ;;  %v159_v15 = vld [vmem:[%s1632_s18 + $0x29] sm:$0xff] }
  0x14   : > { %1427 = vmatpush3.msra.mxu0 %v769_v4  ;;  %1315 = vmatprep.mubr.msk.f32.mxu1 %vm1586_vm1, %v1585_v2  ;;  %v1213_v12 = vld [vmem:[%s1632_s18 + $0x79] sm:$0xff]  ;;  %v1214_v14 = vld [vmem:[%s1632_s18 + $0x81] sm:$0xff]  ;;  %v1215_v16 = vld [vmem:[%s1632_s18 + $0x89] sm:$0xff] }
  0x15   : > { %1402 = vmatprep.mubr.msk.f32.mxu0 %vm1586_vm1, %v1585_v2  ;;  %1368 = vmatprep.subr.mxu1 %v1585_v2  ;;  %v160_v17 = vld [vmem:[%s1632_s18 + $0x31] sm:$0xff]  ;;  %v161_v19 = vld [vmem:[%s1632_s18 + $0x39] sm:$0xff]  ;;  %v162_v21 = vld [vmem:[%s1632_s18 + $0x41] sm:$0xff] }
  0x16   : > { %1455 = vmatprep.subr.mxu0 %v1585_v2  ;;  %1316 = vmatmul.mubr.msk.f32.gmra.mrb[2].mxu1 %vm164_vm2, %v155_v7  ;;  %v1216_v18 = vld [vmem:[%s1632_s18 + $0x91] sm:$0xff]  ;;  %v1217_v20 = vld [vmem:[%s1632_s18 + $0x99] sm:$0xff]  ;;  %v1218_v22 = vld [vmem:[%s1632_s18 + $0xa1] sm:$0xff] }
  0x17   : > { %1403 = vmatmul.mubr.msk.f32.gmra.mrb[2].mxu0 %vm164_vm2, %v1211_v8  ;;  %1318 = vmatprep.mubr.msk.f32.mxu1 %vm1586_vm1, %v1585_v2  ;;  %v144_v23 = vld [vmem:[%s1632_s18] sm:$0xff]  ;;  %v145_v26 = vld [vmem:[%s1632_s18 + $0x8] sm:$0xff]  ;;  %v146_v27 = vld [vmem:[%s1632_s18 + $0x10] sm:$0xff] }
  0x18   : > { %1405 = vmatprep.mubr.msk.f32.mxu0 %vm1586_vm1, %v1585_v2  ;;  %v147_v28 = vld [vmem:[%s1632_s18 + $0x18] sm:$0xff]  ;;  %v148_v29 = vld [vmem:[%s1632_s18 + $0x20] sm:$0xff]  ;;  %v149_v30 = vld [vmem:[%s1632_s18 + $0x28] sm:$0xff] }
  0x19   : > { %v150_v31 = vld [vmem:[%s1632_s18 + $0x30] sm:$0xff]  ;;  %v151_v32 = vld [vmem:[%s1632_s18 + $0x38] sm:$0xff]  ;;  %v152_v33 = vld [vmem:[%s1632_s18 + $0x40] sm:$0xff] }
  0x1a   : > { %1319 = vmatmul.mubr.msk.f32.gmra.mrb[4].mxu1 %vm164_vm2, %v156_v9  ;;  %v768_v34 = vld [vmem:[%s1632_s18 + $0x49] sm:$0xff]  ;;  %v1192_v35 = vld [vmem:[%s1632_s18 + $0x60] sm:$0xff]  ;;  %v917_v38 = vld [vmem:[%s1632_s18 + $0x12] sm:$0xff] }
  0x1b   : > { %1406 = vmatmul.mubr.msk.f32.gmra.mrb[4].mxu0 %vm164_vm2, %v1212_v10  ;;  %1321 = vmatprep.mubr.msk.f32.mxu1 %vm1586_vm1, %v1585_v2  ;;  %v916_v36 = vld [vmem:[%s1632_s18 + $0xa] sm:$0xff]  ;;  %v918_v40 = vld [vmem:[%s1632_s18 + $0x1a] sm:$0xff]  ;;  %v919_v42 = vld [vmem:[%s1632_s18 + $0x22] sm:$0xff] }
  0x1c   : > { %1408 = vmatprep.mubr.msk.f32.mxu0 %vm1586_vm1, %v1585_v2  ;;  %v1193_v37 = vld [vmem:[%s1632_s18 + $0x68] sm:$0xff]  ;;  %v1194_v39 = vld [vmem:[%s1632_s18 + $0x70] sm:$0xff]  ;;  %v1195_v41 = vld [vmem:[%s1632_s18 + $0x78] sm:$0xff] }
  0x1d   : > { %v1196_v43 = vld [vmem:[%s1632_s18 + $0x80] sm:$0xff]  ;;  %v920_v44 = vld [vmem:[%s1632_s18 + $0x2a] sm:$0xff]  ;;  %v921_v46 = vld [vmem:[%s1632_s18 + $0x32] sm:$0xff] }
  0x1e   : > { %1322 = vmatmul.mubr.msk.f32.gmra.mrb[6].mxu1 %vm164_vm2, %v157_v11  ;;  %v1197_v45 = vld [vmem:[%s1632_s18 + $0x88] sm:$0xff]  ;;  %v1198_v47 = vld [vmem:[%s1632_s18 + $0x90] sm:$0xff]  ;;  %v922_v48 = vld [vmem:[%s1632_s18 + $0x3a] sm:$0xff] }
  0x1f   : > { %1409 = vmatmul.mubr.msk.f32.gmra.mrb[6].mxu0 %vm164_vm2, %v1213_v12  ;;  %1324 = vmatprep.mubr.msk.f32.mxu1 %vm1586_vm1, %v1585_v2  ;;  %v1199_v49 = vld [vmem:[%s1632_s18 + $0x98] sm:$0xff]  ;;  %v923_v50 = vld [vmem:[%s1632_s18 + $0x42] sm:$0xff]  ;;  %v924_v52 = vld [vmem:[%s1632_s18 + $0x4a] sm:$0xff] }
  0x20   : > { %1411 = vmatprep.mubr.msk.f32.mxu0 %vm1586_vm1, %v1585_v2  ;;  %v1200_v51 = vld [vmem:[%s1632_s18 + $0xa0] sm:$0xff] }
  0x22   : > { %1325 = vmatmul.mubr.msk.f32.gmra.mrb[8].mxu1 %vm164_vm2, %v158_v13 }
  0x23   : > { %1412 = vmatmul.mubr.msk.f32.gmra.mrb[8].mxu0 %vm164_vm2, %v1214_v14  ;;  %1327 = vmatprep.mubr.msk.f32.mxu1 %vm1586_vm1, %v1585_v2 }
  0x24   : > { %1414 = vmatprep.mubr.msk.f32.mxu0 %vm1586_vm1, %v1585_v2 }
  0x26   : > { %1328 = vmatmul.mubr.msk.f32.gmra.mrb[10].mxu1 %vm164_vm2, %v159_v15 }
  0x27   : > { %1415 = vmatmul.mubr.msk.f32.gmra.mrb[10].mxu0 %vm164_vm2, %v1215_v16  ;;  %1330 = vmatprep.mubr.msk.f32.mxu1 %vm1586_vm1, %v1585_v2 }
  0x28   : > { %1417 = vmatprep.mubr.msk.f32.mxu0 %vm1586_vm1, %v1585_v2 }
  0x2a   : > { %1331 = vmatmul.mubr.msk.f32.gmra.mrb[12].mxu1 %vm164_vm2, %v160_v17 }
  0x2b   : > { %1418 = vmatmul.mubr.msk.f32.gmra.mrb[12].mxu0 %vm164_vm2, %v1216_v18  ;;  %1333 = vmatprep.mubr.msk.f32.mxu1 %vm1586_vm1, %v1585_v2 }
  0x2c   : > { %1420 = vmatprep.mubr.msk.f32.mxu0 %vm1586_vm1, %v1585_v2 }
  0x2e   : > { %1334 = vmatmul.mubr.msk.f32.gmra.mrb[14].mxu1 %vm164_vm2, %v161_v19 }
  0x2f   : > { %1421 = vmatmul.mubr.msk.f32.gmra.mrb[14].mxu0 %vm164_vm2, %v1217_v20  ;;  %1336 = vmatprep.mubr.msk.f32.mxu1 %vm1586_vm1, %v1585_v2 }
  0x30   : > { %1423 = vmatprep.mubr.msk.f32.mxu0 %vm1586_vm1, %v1585_v2 }
  0x32   : > { %1337 = vmatmul.mubr.msk.f32.gmra.mrb[16].mxu1 %vm164_vm2, %v162_v21 }
  0x33   : > { %1424 = vmatmul.mubr.msk.f32.gmra.mrb[16].mxu0 %vm164_vm2, %v1218_v22  ;;  %1341 = vmatprep.mubr.msk.f32.mxu1 %vm1586_vm1, %v1585_v2 }
  0x34   : > { %1428 = vmatprep.mubr.msk.f32.mxu0 %vm1586_vm1, %v1585_v2 }
  0x36   : > { %1342 = vmatmul.mubr.msk.f32.vlgmr.msra.gmra.mrb[0].mxu1 %vm306_vm3, %v144_v23 }
  0x37   : > { %1429 = vmatmul.mubr.msk.f32.vlgmr.msra.gmra.mrb[0].mxu0 %vm306_vm3, %v155_v7  ;;  %1369 = vmatpush3.msra.mxu1 %v454_v24 }
  0x38   : > { %1456 = vmatpush3.msk.msra.mxu0 %vm192_vm0, %v925_v25  ;;  %1344 = vmatprep.mubr.msk.f32.mxu1 %vm1586_vm1, %v1585_v2 }
  0x39   : > { %1431 = vmatprep.mubr.msk.f32.mxu0 %vm1586_vm1, %v1585_v2 }
  0x3a   : > { %1345 = vmatmul.mubr.msk.f32.gmra.mrb[2].mxu1 %vm306_vm3, %v145_v26 }
  0x3b   : > { %1432 = vmatmul.mubr.msk.f32.gmra.mrb[2].mxu0 %vm306_vm3, %v156_v9  ;;  %1347 = vmatprep.mubr.msk.f32.mxu1 %vm1586_vm1, %v1585_v2 }
  0x3c   : > { %1434 = vmatprep.mubr.msk.f32.mxu0 %vm1586_vm1, %v1585_v2 }
  0x3e   : > { %1348 = vmatmul.mubr.msk.f32.gmra.mrb[4].mxu1 %vm306_vm3, %v146_v27 }
  0x3f   : > { %1435 = vmatmul.mubr.msk.f32.gmra.mrb[4].mxu0 %vm306_vm3, %v157_v11  ;;  %1350 = vmatprep.mubr.msk.f32.mxu1 %vm1586_vm1, %v1585_v2 }
  0x40   : > { %1437 = vmatprep.mubr.msk.f32.mxu0 %vm1586_vm1, %v1585_v2 }
  0x42   : > { %1351 = vmatmul.mubr.msk.f32.gmra.mrb[6].mxu1 %vm306_vm3, %v147_v28 }
  0x43   : > { %1438 = vmatmul.mubr.msk.f32.gmra.mrb[6].mxu0 %vm306_vm3, %v158_v13  ;;  %1353 = vmatprep.mubr.msk.f32.mxu1 %vm1586_vm1, %v1585_v2 }
  0x44   : > { %1440 = vmatprep.mubr.msk.f32.mxu0 %vm1586_vm1, %v1585_v2 }
  0x46   : > { %1354 = vmatmul.mubr.msk.f32.gmra.mrb[8].mxu1 %vm306_vm3, %v148_v29 }
  0x47   : > { %1441 = vmatmul.mubr.msk.f32.gmra.mrb[8].mxu0 %vm306_vm3, %v159_v15  ;;  %1356 = vmatprep.mubr.msk.f32.mxu1 %vm1586_vm1, %v1585_v2 }
  0x48   : > { %1443 = vmatprep.mubr.msk.f32.mxu0 %vm1586_vm1, %v1585_v2 }
  0x4a   : > { %1357 = vmatmul.mubr.msk.f32.gmra.mrb[10].mxu1 %vm306_vm3, %v149_v30 }
  0x4b   : > { %1444 = vmatmul.mubr.msk.f32.gmra.mrb[10].mxu0 %vm306_vm3, %v160_v17  ;;  %1359 = vmatprep.mubr.msk.f32.mxu1 %vm1586_vm1, %v1585_v2 }
  0x4c   : > { %1446 = vmatprep.mubr.msk.f32.mxu0 %vm1586_vm1, %v1585_v2 }
  0x4e   : > { %1360 = vmatmul.mubr.msk.f32.gmra.mrb[12].mxu1 %vm306_vm3, %v150_v31 }
  0x4f   : > { %1447 = vmatmul.mubr.msk.f32.gmra.mrb[12].mxu0 %vm306_vm3, %v161_v19  ;;  %1362 = vmatprep.mubr.msk.f32.mxu1 %vm1586_vm1, %v1585_v2 }
  0x50   : > { %1449 = vmatprep.mubr.msk.f32.mxu0 %vm1586_vm1, %v1585_v2 }
  0x52   : > { %1363 = vmatmul.mubr.msk.f32.gmra.mrb[14].mxu1 %vm306_vm3, %v151_v32 }
  0x53   : > { %1450 = vmatmul.mubr.msk.f32.gmra.mrb[14].mxu0 %vm306_vm3, %v162_v21  ;;  %1365 = vmatprep.mubr.msk.f32.mxu1 %vm1586_vm1, %v1585_v2 }
  0x54   : > { %1452 = vmatprep.mubr.msk.f32.mxu0 %vm1586_vm1, %v1585_v2 }
  0x56   : > { %1366 = vmatmul.mubr.msk.f32.gmra.mrb[16].mxu1 %vm306_vm3, %v152_v33 }
  0x57   : > { %1453 = vmatmul.mubr.msk.f32.gmra.mrb[16].mxu0 %vm306_vm3, %v768_v34  ;;  %1370 = vmatprep.mubr.msk.f32.mxu1 %vm1586_vm1, %v1585_v2 }
  0x58   : > { %1457 = vmatprep.mubr.msk.f32.mxu0 %vm1586_vm1, %v1585_v2 }
  0x5a   : > { %1371 = vmatmul.mubr.msk.f32.vlgmr.msra.gmra.mrb[0].mxu1 %vm306_vm3, %v1192_v35 }
  0x5b   : > { %1458 = vmatmul.mubr.msk.f32.vlgmr.msra.gmra.mrb[0].mxu0 %vm164_vm2, %v916_v36  ;;  %1373 = vmatprep.mubr.msk.f32.mxu1 %vm1586_vm1, %v1585_v2 }
  0x5c   : > { %1460 = vmatprep.mubr.msk.f32.mxu0 %vm1586_vm1, %v1585_v2 }
  0x5e   : > { %1374 = vmatmul.mubr.msk.f32.gmra.mrb[2].mxu1 %vm306_vm3, %v1193_v37 }
  0x5f   : > { %1461 = vmatmul.mubr.msk.f32.gmra.mrb[2].mxu0 %vm164_vm2, %v917_v38  ;;  %1376 = vmatprep.mubr.msk.f32.mxu1 %vm1586_vm1, %v1585_v2 }
  0x60   : > { %1463 = vmatprep.mubr.msk.f32.mxu0 %vm1586_vm1, %v1585_v2 }
  0x62   : > { %1377 = vmatmul.mubr.msk.f32.gmra.mrb[4].mxu1 %vm306_vm3, %v1194_v39 }
  0x63   : > { %1464 = vmatmul.mubr.msk.f32.gmra.mrb[4].mxu0 %vm164_vm2, %v918_v40  ;;  %1379 = vmatprep.mubr.msk.f32.mxu1 %vm1586_vm1, %v1585_v2 }
  0x64   : > { %1466 = vmatprep.mubr.msk.f32.mxu0 %vm1586_vm1, %v1585_v2 }
  0x66   : > { %1380 = vmatmul.mubr.msk.f32.gmra.mrb[6].mxu1 %vm306_vm3, %v1195_v41 }
  0x67   : > { %1467 = vmatmul.mubr.msk.f32.gmra.mrb[6].mxu0 %vm164_vm2, %v919_v42  ;;  %1382 = vmatprep.mubr.msk.f32.mxu1 %vm1586_vm1, %v1585_v2 }
  0x68   : > { %1469 = vmatprep.mubr.msk.f32.mxu0 %vm1586_vm1, %v1585_v2 }
  0x6a   : > { %1383 = vmatmul.mubr.msk.f32.gmra.mrb[8].mxu1 %vm306_vm3, %v1196_v43 }
  0x6b   : > { %1470 = vmatmul.mubr.msk.f32.gmra.mrb[8].mxu0 %vm164_vm2, %v920_v44  ;;  %1385 = vmatprep.mubr.msk.f32.mxu1 %vm1586_vm1, %v1585_v2 }
  0x6c   : > { %1472 = vmatprep.mubr.msk.f32.mxu0 %vm1586_vm1, %v1585_v2 }
  0x6e   : > { %1386 = vmatmul.mubr.msk.f32.gmra.mrb[10].mxu1 %vm306_vm3, %v1197_v45 }
  0x6f   : > { %1473 = vmatmul.mubr.msk.f32.gmra.mrb[10].mxu0 %vm164_vm2, %v921_v46  ;;  %1388 = vmatprep.mubr.msk.f32.mxu1 %vm1586_vm1, %v1585_v2 }
  0x70   : > { %1475 = vmatprep.mubr.msk.f32.mxu0 %vm1586_vm1, %v1585_v2 }
  0x72   : > { %1389 = vmatmul.mubr.msk.f32.gmra.mrb[12].mxu1 %vm306_vm3, %v1198_v47 }
  0x73   : > { %1476 = vmatmul.mubr.msk.f32.gmra.mrb[12].mxu0 %vm164_vm2, %v922_v48  ;;  %1391 = vmatprep.mubr.msk.f32.mxu1 %vm1586_vm1, %v1585_v2 }
  0x74   : > { %1478 = vmatprep.mubr.msk.f32.mxu0 %vm1586_vm1, %v1585_v2 }
  0x76   : > { %1392 = vmatmul.mubr.msk.f32.gmra.mrb[14].mxu1 %vm306_vm3, %v1199_v49 }
  0x77   : > { %1479 = vmatmul.mubr.msk.f32.gmra.mrb[14].mxu0 %vm164_vm2, %v923_v50  ;;  %1394 = vmatprep.mubr.msk.f32.mxu1 %vm1586_vm1, %v1585_v2 }
  0x78   : > { %1481 = vmatprep.mubr.msk.f32.mxu0 %vm1586_vm1, %v1585_v2 }
  0x7a   : > { %1395 = vmatmul.mubr.msk.f32.gmra.mrb[16].mxu1 %vm306_vm3, %v1200_v51 }
  0x7b   : > { %1482 = vmatmul.mubr.msk.f32.gmra.mrb[16].mxu0 %vm164_vm2, %v924_v52 }
 0x12d   : > { %v548_v53 = vpop.f32.mrb[0].mxu1 }
 0x12e   : > { %v1022_v54 = vpop.f32.mrb[0].mxu0  ;;  %v1372_v56 = vpop.f32.mrb[1].mxu1 }
 0x12f   : > { %v1484_v55 = vadd.f32 %v1022_v54, %v548_v53  ;;  %v1459_v57 = vpop.f32.mrb[1].mxu0 }
 0x131   : > { %vm1075_vm4 = vcmp.ge.f32.partialorder %v1484_v55, 0.0  ;;  %v1084_v58 = vmul.f32 0.2, %v1484_v55  ;;  %v553_v59 = vpop.f32.mrb[2].mxu1 }
 0x132   : > { %v1027_v60 = vpop.f32.mrb[2].mxu0  ;;  %v1375_v63 = vpop.f32.mrb[3].mxu1 }
 0x133   : > { %v1093_v61 = vsel %vm1075_vm4, %v1484_v55, %v1084_v58  ;;  %v1485_v62 = vadd.f32 %v1027_v60, %v553_v59  ;;  %v1462_v0 = vpop.f32.mrb[3].mxu0 }
 0x134   : > { %1102 = vst.msk [vmem:[%s1857_s30] sm:$0xff] %vm306_vm3, %v1093_v61 }
 0x135   : > { %vm1076_vm5 = vcmp.ge.f32.partialorder %v1485_v62, 0.0  ;;  %v1085_v1 = vmul.f32 0.2, %v1485_v62  ;;  %v558_v2 = vpop.f32.mrb[4].mxu1 }
 0x136   : > { %v1032_v3 = vpop.f32.mrb[4].mxu0  ;;  %v1378_v6 = vpop.f32.mrb[5].mxu1 }
 0x137   : > { %v1094_v4 = vsel %vm1076_vm5, %v1485_v62, %v1085_v1  ;;  %v1486_v5 = vadd.f32 %v1032_v3, %v558_v2  ;;  %v1465_v7 = vpop.f32.mrb[5].mxu0 }
 0x138   : > { %1103 = vst.msk [vmem:[%s1857_s30 + $0x8] sm:$0xff] %vm306_vm3, %v1094_v4 }
 0x139   : > { %vm1077_vm6 = vcmp.ge.f32.partialorder %v1486_v5, 0.0  ;;  %v1086_v8 = vmul.f32 0.2, %v1486_v5  ;;  %v563_v9 = vpop.f32.mrb[6].mxu1 }
 0x13a   : > { %v1037_v10 = vpop.f32.mrb[6].mxu0  ;;  %v1381_v13 = vpop.f32.mrb[7].mxu1 }
 0x13b   : > { %v1095_v11 = vsel %vm1077_vm6, %v1486_v5, %v1086_v8  ;;  %v1487_v12 = vadd.f32 %v1037_v10, %v563_v9  ;;  %v1468_v14 = vpop.f32.mrb[7].mxu0 }
 0x13c   : > { %1104 = vst.msk [vmem:[%s1857_s30 + $0x10] sm:$0xff] %vm306_vm3, %v1095_v11 }
 0x13d   : > { %vm1078_vm7 = vcmp.ge.f32.partialorder %v1487_v12, 0.0  ;;  %v1087_v15 = vmul.f32 0.2, %v1487_v12  ;;  %v568_v16 = vpop.f32.mrb[8].mxu1 }
 0x13e   : > { %v1042_v17 = vpop.f32.mrb[8].mxu0  ;;  %v1384_v20 = vpop.f32.mrb[9].mxu1 }
 0x13f   : > { %v1096_v18 = vsel %vm1078_vm7, %v1487_v12, %v1087_v15  ;;  %v1488_v19 = vadd.f32 %v1042_v17, %v568_v16  ;;  %v1471_v21 = vpop.f32.mrb[9].mxu0 }
 0x140   : > { %1105 = vst.msk [vmem:[%s1857_s30 + $0x18] sm:$0xff] %vm306_vm3, %v1096_v18 }
 0x141   : > { %vm1079_vm8 = vcmp.ge.f32.partialorder %v1488_v19, 0.0  ;;  %v1088_v22 = vmul.f32 0.2, %v1488_v19  ;;  %v573_v23 = vpop.f32.mrb[10].mxu1 }
 0x142   : > { %v1047_v24 = vpop.f32.mrb[10].mxu0  ;;  %v1387_v27 = vpop.f32.mrb[11].mxu1 }
 0x143   : > { %v1097_v25 = vsel %vm1079_vm8, %v1488_v19, %v1088_v22  ;;  %v1489_v26 = vadd.f32 %v1047_v24, %v573_v23  ;;  %v1474_v28 = vpop.f32.mrb[11].mxu0 }
 0x144   : > { %1106 = vst.msk [vmem:[%s1857_s30 + $0x20] sm:$0xff] %vm306_vm3, %v1097_v25 }
 0x145   : > { %vm1080_vm9 = vcmp.ge.f32.partialorder %v1489_v26, 0.0  ;;  %v1089_v29 = vmul.f32 0.2, %v1489_v26  ;;  %v578_v30 = vpop.f32.mrb[12].mxu1 }
 0x146   : > { %v1052_v31 = vpop.f32.mrb[12].mxu0  ;;  %v1390_v34 = vpop.f32.mrb[13].mxu1 }
 0x147   : > { %v1098_v32 = vsel %vm1080_vm9, %v1489_v26, %v1089_v29  ;;  %v1490_v33 = vadd.f32 %v1052_v31, %v578_v30  ;;  %v1477_v35 = vpop.f32.mrb[13].mxu0 }
 0x148   : > { %1107 = vst.msk [vmem:[%s1857_s30 + $0x28] sm:$0xff] %vm306_vm3, %v1098_v32 }
 0x149   : > { %vm1081_vm10 = vcmp.ge.f32.partialorder %v1490_v33, 0.0  ;;  %v1090_v36 = vmul.f32 0.2, %v1490_v33  ;;  %v583_v37 = vpop.f32.mrb[14].mxu1 }
 0x14a   : > { %v1057_v38 = vpop.f32.mrb[14].mxu0  ;;  %v1393_v41 = vpop.f32.mrb[15].mxu1 }
 0x14b   : > { %v1099_v39 = vsel %vm1081_vm10, %v1490_v33, %v1090_v36  ;;  %v1491_v40 = vadd.f32 %v1057_v38, %v583_v37  ;;  %v1480_v42 = vpop.f32.mrb[15].mxu0 }
 0x14c   : > { %1108 = vst.msk [vmem:[%s1857_s30 + $0x30] sm:$0xff] %vm306_vm3, %v1099_v39 }
 0x14d   : > { %vm1082_vm11 = vcmp.ge.f32.partialorder %v1491_v40, 0.0  ;;  %v1091_v43 = vmul.f32 0.2, %v1491_v40  ;;  %v588_v44 = vpop.f32.mrb[16].mxu1 }
 0x14e   : > { %v1062_v45 = vpop.f32.mrb[16].mxu0  ;;  %v1396_v48 = vpop.f32.mrb[17].mxu1 }
 0x14f   : > { %v1100_v46 = vsel %vm1082_vm11, %v1491_v40, %v1091_v43  ;;  %v1492_v47 = vadd.f32 %v1062_v45, %v588_v44  ;;  %v1483_v49 = vpop.f32.mrb[17].mxu0 }
 0x150   : > { %1109 = vst.msk [vmem:[%s1857_s30 + $0x38] sm:$0xff] %vm306_vm3, %v1100_v46 }
 0x151   : > { %vm1083_vm12 = vcmp.ge.f32.partialorder %v1492_v47, 0.0  ;;  %v1092_v50 = vmul.f32 0.2, %v1492_v47 }
 0x153   : > { %v1101_v51 = vsel %vm1083_vm12, %v1492_v47, %v1092_v50 }
 0x154   : > { %1110 = vst.msk [vmem:[%s1857_s30 + $0x40] sm:$0xff] %vm306_vm3, %v1101_v51 }
 0x155 PF: > { %s12_s9 = sadd.s32 1, %s1583_s9  }
 0x156   : > { %p9_p4 = scmp.ge.s32.totalorder %s12_s9, 4  }
 0x158   :  { %11 = sbr.rel (!%p9_p4) target bundleno = 1 (0x1), region = 59 }

// kernel: down_block_drn_forward.5
= control target key start
LH: loop header
LB: loop body
LE: loop exit
PB: predicated region body
PF: predicated region fallthrough
CT: control target
= control target key end

     0   :  { %s1317_s9 = smov 0   ;;  %s1485_s0 = inlined_call_operand.vmem [shape: f32[2,1,48,8], index: 0, kind: input, shape index: {}]   ;;  %s1486_s1 = inlined_call_operand.vmem [shape: f32[72,4], index: 1, kind: input, shape index: {}]   ;;  %s1487_s2 = inlined_call_operand.vmem [shape: f32[2,24,4], index: 2, kind: output, shape index: {}]  }
   0x1 LB: > { %s1062_s10 = sadd.s32 4294967295, %s1298_s9   ;;  %p1066_p0 = scmp.ge.s32.totalorder %s1298_s9, 1  ;;  %s1298_s9 = sphi %s1317_s9, %s12_s9  }
   0x2   : > { %p112_p1 = scmp.lt.s32.totalorder %s1298_s9, 3 }
   0x4   : > { %p113_p2 = pnand %p1066_p0, %p112_p1 }
   0x5   : > { %v151_v0 = vld [vmem:[%s1486_s1 + $0x8] sm:$0xff] (!%p113_p2)  ;;  %v1331_v1 = vld [vmem:[%s1486_s1 + $0x20] sm:$0xff] (!%p113_p2)  ;;  %p134_p3 = scmp.lt.s32.totalorder (!%p113_p2), %s1062_s10, 1  ;;  %v1300_v2 = vmov (!%p113_p2), 0.0   ;;  %vm1301_vm0 = vmmov (!%p113_p2), 0   ;;  %vm152_vm1 = vcmask (!%p113_p2), 64512  }
   0x6   : > { %116 = sbr.rel (%p113_p2) target bundleno = 286 (0x11e), region = 28  ;;  %1134 = vmatprep.subr.mxu1 (!%p113_p2), %v1300_v2  ;;  %1178 = vmatprep.subr.mxu0 (!%p113_p2), %v1300_v2  ;;  %v147_v3 = vld [vmem:[%s1486_s1] sm:$0xff] (!%p113_p2)  ;;  %v622_v4 = vld [vmem:[%s1486_s1 + $0x28] sm:$0xff] (!%p113_p2)  ;;  %v718_v10 = vld [vmem:[%s1486_s1 + $0x30] sm:$0xff] (!%p113_p2)  ;;  %vm1003_vm2 = vcmask (!%p113_p2), 31744  }
   0x7   : > { %1135 = vmatpush3.msra.mxu1 (!%p113_p2), %v151_v0  ;;  %1179 = vmatpush3.msra.mxu0 (!%p113_p2), %v1331_v1  ;;  %v334_v13 = vld [vmem:[%s1486_s1 + $0x10] sm:$0xff] (!%p113_p2)  ;;  %v814_v16 = vld [vmem:[%s1486_s1 + $0x38] sm:$0xff] (!%p113_p2)  ;;  %v910_v24 = vld [vmem:[%s1486_s1 + $0x40] sm:$0xff] (!%p113_p2) }
   0x8   : > { %1136 = vmatprep.mubr.msk.f32.mxu1 (!%p113_p2), %vm1301_vm0, %v1300_v2  ;;  %1145 = vmatprep.subr.mxu1 (!%p113_p2), %v1300_v2  ;;  %v430_v19 = vld [vmem:[%s1486_s1 + $0x18] sm:$0xff] (!%p113_p2) }
   0x9   : > { %1180 = vmatprep.mubr.msk.f32.mxu0 (!%p113_p2), %vm1301_vm0, %v1300_v2  ;;  %1189 = vmatprep.subr.mxu0 (!%p113_p2), %v1300_v2 }
   0xd   : > { %s1489_s10 = smov (!%p134_p3, %s1062_s10), 1 }
   0xe   : > { %s1280_s15 = smul.u32 48, %s1489_s10 }
   0xf   : > { %s1281_s5 = smul.u32 24, %s1489_s10 }
  0x10   : > { %s1348_s18 = scalar_lea.vmem %s1485_s0, %s1280_s15 }
  0x11   : > { %v148_v5 = vld [vmem:[%s1348_s18 + $0x1] sm:$0xff]  ;;  %v149_v7 = vld [vmem:[%s1348_s18 + $0x9] sm:$0xff]  ;;  %v150_v8 = vld [vmem:[%s1348_s18 + $0x11] sm:$0xff]  ;;  %s143_s8 = scalar_lea.vmem %s1487_s2, %s1281_s5 }
  0x12   : > { %v523_v6 = vld [vmem:[%s1348_s18 + $0x7] sm:$0xff]  ;;  %1137 = vmatmul.mubr.msk.f32.vlgmr.msra.gmra.mrb[0].mxu1 %vm152_vm1, %v148_v5  ;;  %v620_v12 = vld [vmem:[%s1348_s18 + $0x10] sm:$0xff]  ;;  %v621_v14 = vld [vmem:[%s1348_s18 + $0x18] sm:$0xff] }
  0x13   : > { %1181 = vmatmul.mubr.msk.f32.vlgmr.msra.gmra.mrb[0].mxu0 %vm152_vm1, %v523_v6  ;;  %1146 = vmatpush3.msra.mxu1 %v147_v3  ;;  %v619_v9 = vld [vmem:[%s1348_s18 + $0x8] sm:$0xff]  ;;  %v144_v11 = vld [vmem:[%s1348_s18] sm:$0xff]  ;;  %v716_v18 = vld [vmem:[%s1348_s18 + $0x14] sm:$0xff] }
  0x14   : > { %1190 = vmatpush3.msra.mxu0 %v622_v4  ;;  %1139 = vmatprep.mubr.msk.f32.mxu1 %vm1301_vm0, %v1300_v2  ;;  %v715_v15 = vld [vmem:[%s1348_s18 + $0xc] sm:$0xff]  ;;  %v331_v17 = vld [vmem:[%s1348_s18 + $0x2] sm:$0xff]  ;;  %v812_v26 = vld [vmem:[%s1348_s18 + $0x15] sm:$0xff] }
  0x15   : > { %1191 = vmatprep.mubr.msk.f32.mxu0 %vm1301_vm0, %v1300_v2  ;;  %1200 = vmatprep.subr.mxu0 %v1300_v2  ;;  %v332_v20 = vld [vmem:[%s1348_s18 + $0xa] sm:$0xff]  ;;  %v717_v21 = vld [vmem:[%s1348_s18 + $0x1c] sm:$0xff]  ;;  %v333_v22 = vld [vmem:[%s1348_s18 + $0x12] sm:$0xff] }
  0x16   : > { %1156 = vmatprep.subr.mxu1 %v1300_v2  ;;  %1140 = vmatmul.mubr.msk.f32.gmra.mrb[2].mxu1 %vm152_vm1, %v149_v7  ;;  %v811_v23 = vld [vmem:[%s1348_s18 + $0xd] sm:$0xff]  ;;  %v813_v28 = vld [vmem:[%s1348_s18 + $0x1d] sm:$0xff] }
  0x17   : > { %1142 = vmatprep.mubr.msk.f32.mxu1 %vm1301_vm0, %v1300_v2  ;;  %v427_v25 = vld [vmem:[%s1348_s18 + $0x6] sm:$0xff]  ;;  %v428_v27 = vld [vmem:[%s1348_s18 + $0xe] sm:$0xff]  ;;  %v429_v29 = vld [vmem:[%s1348_s18 + $0x16] sm:$0xff] }
  0x18   : > { %v524_v30 = vld [vmem:[%s1348_s18 + $0xf] sm:$0xff]  ;;  %v525_v31 = vld [vmem:[%s1348_s18 + $0x17] sm:$0xff] }
  0x19   : > { %v909_v32 = vld [vmem:[%s1348_s18 + $0x1e] sm:$0xff] }
  0x1a   : > { %1143 = vmatmul.mubr.msk.f32.gmra.mrb[4].mxu1 %vm152_vm1, %v150_v8 }
  0x1b   : > { %1192 = vmatmul.mubr.msk.f32.vlgmr.msra.gmra.mrb[0].mxu0 %vm152_vm1, %v619_v9  ;;  %1147 = vmatprep.mubr.msk.f32.mxu1 %vm1301_vm0, %v1300_v2 }
  0x1c   : > { %1201 = vmatpush3.msra.mxu0 %v718_v10  ;;  %1194 = vmatprep.mubr.msk.f32.mxu0 %vm1301_vm0, %v1300_v2 }
  0x1d   : > { %1211 = vmatprep.subr.mxu0 %v1300_v2 }
  0x1e   : > { %1148 = vmatmul.mubr.msk.f32.vlgmr.msra.gmra.mrb[0].mxu1 %vm152_vm1, %v144_v11 }
  0x1f   : > { %1195 = vmatmul.mubr.msk.f32.gmra.mrb[2].mxu0 %vm152_vm1, %v620_v12  ;;  %1157 = vmatpush3.msra.mxu1 %v334_v13 }
  0x20   : > { %1150 = vmatprep.mubr.msk.f32.mxu1 %vm1301_vm0, %v1300_v2  ;;  %1197 = vmatprep.mubr.msk.f32.mxu0 %vm1301_vm0, %v1300_v2 }
  0x21   : > { %1167 = vmatprep.subr.mxu1 %v1300_v2 }
  0x22   : > { %1151 = vmatmul.mubr.msk.f32.gmra.mrb[2].mxu1 %vm152_vm1, %v619_v9 }
  0x23   : > { %1198 = vmatmul.mubr.msk.f32.gmra.mrb[4].mxu0 %vm152_vm1, %v621_v14  ;;  %1153 = vmatprep.mubr.msk.f32.mxu1 %vm1301_vm0, %v1300_v2 }
  0x24   : > { %1202 = vmatprep.mubr.msk.f32.mxu0 %vm1301_vm0, %v1300_v2 }
  0x26   : > { %1154 = vmatmul.mubr.msk.f32.gmra.mrb[4].mxu1 %vm152_vm1, %v620_v12 }
  0x27   : > { %1203 = vmatmul.mubr.msk.f32.vlgmr.msra.gmra.mrb[0].mxu0 %vm152_vm1, %v715_v15  ;;  %1158 = vmatprep.mubr.msk.f32.mxu1 %vm1301_vm0, %v1300_v2 }
  0x28   : > { %1212 = vmatpush3.msra.mxu0 %v814_v16  ;;  %1205 = vmatprep.mubr.msk.f32.mxu0 %vm1301_vm0, %v1300_v2 }
  0x29   : > { %1222 = vmatprep.subr.mxu0 %v1300_v2 }
  0x2a   : > { %1159 = vmatmul.mubr.msk.f32.vlgmr.msra.gmra.mrb[0].mxu1 %vm152_vm1, %v331_v17 }
  0x2b   : > { %1206 = vmatmul.mubr.msk.f32.gmra.mrb[2].mxu0 %vm152_vm1, %v716_v18  ;;  %1168 = vmatpush3.msra.mxu1 %v430_v19 }
  0x2c   : > { %1161 = vmatprep.mubr.msk.f32.mxu1 %vm1301_vm0, %v1300_v2  ;;  %1208 = vmatprep.mubr.msk.f32.mxu0 %vm1301_vm0, %v1300_v2 }
  0x2d   : > { %1233 = vmatprep.subr.mxu1 %v1300_v2 }
  0x2e   : > { %1162 = vmatmul.mubr.msk.f32.gmra.mrb[2].mxu1 %vm152_vm1, %v332_v20 }
  0x2f   : > { %1209 = vmatmul.mubr.msk.f32.gmra.mrb[4].mxu0 %vm152_vm1, %v717_v21  ;;  %1164 = vmatprep.mubr.msk.f32.mxu1 %vm1301_vm0, %v1300_v2 }
  0x30   : > { %1213 = vmatprep.mubr.msk.f32.mxu0 %vm1301_vm0, %v1300_v2 }
  0x32   : > { %1165 = vmatmul.mubr.msk.f32.gmra.mrb[4].mxu1 %vm152_vm1, %v333_v22 }
  0x33   : > { %1214 = vmatmul.mubr.msk.f32.vlgmr.msra.gmra.mrb[0].mxu0 %vm152_vm1, %v811_v23  ;;  %1169 = vmatprep.mubr.msk.f32.mxu1 %vm1301_vm0, %v1300_v2 }
  0x34   : > { %1223 = vmatpush3.msra.mxu0 %v910_v24  ;;  %1216 = vmatprep.mubr.msk.f32.mxu0 %vm1301_vm0, %v1300_v2 }
  0x36   : > { %1170 = vmatmul.mubr.msk.f32.vlgmr.msra.gmra.mrb[0].mxu1 %vm152_vm1, %v427_v25 }
  0x37   : > { %1217 = vmatmul.mubr.msk.f32.gmra.mrb[2].mxu0 %vm152_vm1, %v812_v26  ;;  %1234 = vmatpush3.msra.mxu1 %v1331_v1 }
  0x38   : > { %1172 = vmatprep.mubr.msk.f32.mxu1 %vm1301_vm0, %v1300_v2  ;;  %1219 = vmatprep.mubr.msk.f32.mxu0 %vm1301_vm0, %v1300_v2 }
  0x3a   : > { %1173 = vmatmul.mubr.msk.f32.gmra.mrb[2].mxu1 %vm152_vm1, %v428_v27 }
  0x3b   : > { %1220 = vmatmul.mubr.msk.f32.gmra.mrb[4].mxu0 %vm152_vm1, %v813_v28  ;;  %1175 = vmatprep.mubr.msk.f32.mxu1 %vm1301_vm0, %v1300_v2 }
  0x3c   : > { %1224 = vmatprep.mubr.msk.f32.mxu0 %vm1301_vm0, %v1300_v2 }
  0x3e   : > { %1176 = vmatmul.mubr.msk.f32.gmra.mrb[4].mxu1 %vm152_vm1, %v429_v29 }
  0x3f   : > { %1225 = vmatmul.mubr.msk.f32.vlgmr.msra.gmra.mrb[0].mxu0 %vm152_vm1, %v428_v27  ;;  %1183 = vmatprep.mubr.msk.f32.mxu1 %vm1301_vm0, %v1300_v2 }
  0x40   : > { %1227 = vmatprep.mubr.msk.f32.mxu0 %vm1301_vm0, %v1300_v2 }
  0x42   : > { %1184 = vmatmul.mubr.msk.f32.vlgmr.msra.gmra.mrb[2].mxu1 %vm152_vm1, %v524_v30 }
  0x43   : > { %1228 = vmatmul.mubr.msk.f32.gmra.mrb[2].mxu0 %vm152_vm1, %v429_v29  ;;  %1186 = vmatprep.mubr.msk.f32.mxu1 %vm1301_vm0, %v1300_v2 }
  0x44   : > { %1230 = vmatprep.mubr.msk.f32.mxu0 %vm1301_vm0, %v1300_v2 }
  0x46   : > { %1187 = vmatmul.mubr.msk.f32.gmra.mrb[4].mxu1 %vm152_vm1, %v525_v31 }
  0x47   : > { %1231 = vmatmul.mubr.msk.f32.gmra.mrb[4].mxu0 %vm152_vm1, %v909_v32 }
 0x109   : > { %v506_v33 = vpop.f32.mrb[0].mxu1 }
 0x10a   : > { %v1171_v34 = vpop.f32.mrb[1].mxu1 }
 0x112   : > { %v986_v35 = vpop.f32.mrb[0].mxu0 }
 0x113   : > { %v1235_v36 = vadd.f32 %v986_v35, %v506_v33  ;;  %v1226_v37 = vpop.f32.mrb[1].mxu0 }
 0x115   : > { %1004 = vst.msk [vmem:[%s143_s8] sm:$0xff] %vm1003_vm2, %v1235_v36  ;;  %v607_v38 = vpop.f32.mrb[2].mxu1 }
 0x116   : > { %v991_v39 = vpop.f32.mrb[2].mxu0  ;;  %v1185_v41 = vpop.f32.mrb[3].mxu1 }
 0x117   : > { %v1236_v40 = vadd.f32 %v991_v39, %v607_v38  ;;  %v1229_v42 = vpop.f32.mrb[3].mxu0 }
 0x119   : > { %1005 = vst.msk [vmem:[%s143_s8 + $0x8] sm:$0xff] %vm1003_vm2, %v1236_v40  ;;  %v612_v43 = vpop.f32.mrb[4].mxu1 }
 0x11a   : > { %v996_v44 = vpop.f32.mrb[4].mxu0  ;;  %v1188_v46 = vpop.f32.mrb[5].mxu1 }
 0x11b   : > { %v1237_v45 = vadd.f32 %v996_v44, %v612_v43  ;;  %v1232_v47 = vpop.f32.mrb[5].mxu0 }
 0x11d   : > { %1006 = vst.msk [vmem:[%s143_s8 + $0x10] sm:$0xff] %vm1003_vm2, %v1237_v45 }
 0x11e PF: > { %s12_s9 = sadd.s32 1, %s1298_s9  }
 0x11f   : > { %p9_p4 = scmp.ge.s32.totalorder %s12_s9, 4  }
 0x121   :  { %11 = sbr.rel (!%p9_p4) target bundleno = 1 (0x1), region = 58 }

</bundles_post_ra>
